<compile_context>
chip_gen: v5e
topology: v5e:2x2
jax: 0.10.0
libtpu: 0.0.40
codegen_flags: <defaults>
</compile_context>

<pallas_src>
import functools

import jax
import jax.numpy as jnp
from jax import lax
from jax.experimental import pallas as pl
from jax.experimental.pallas import tpu as pltpu

batchSize = 5
hiddenDim = 3
inputDim = 10
outputDim = 1
seqLen = 8

GATE_BLOCK = 128   # one full lane-width per gate, order [i | f | o | g]
SUBLANE = 8        # f32 sublane tile


def _lstm_linear_kernel(
    x2d_ref,      # (T*Bp, D)        batch-padded, time-major inputs
    hc0_ref,      # (2, Bp, GB)      h0 / c0, lane- and batch-padded
    gp_ref,       # (D+H+1, 4*GB)    packed [Wx ; U ; b], gate-blocked
    lp_ref,       # (GB+1, O)        packed [w_lin_t (lane-padded) ; b_lin]
    y_ref,        # (T*Bp, O)        output slab
    hcT_ref,      # (2, Bp, GB)      final (h_T, c_T)
    xp_ref,       # (T*Bp, 4*GB)     VMEM scratch: hoisted input projection
    hs_ref,       # (T*Bp, GB)       VMEM scratch: stacked hidden states
    *, batch, hidden, in_dim, seq,
):
    Bp, H, D, T = batch, hidden, in_dim, seq
    GB = GATE_BLOCK
    G4 = 4 * GB

    wx = gp_ref[0:D, :]                    # (D, 4*GB)
    u = gp_ref[D:D + H, :]                 # (H, 4*GB)
    b = gp_ref[D + H:D + H + 1, :]         # (1, 4*GB)

    # Prologue: one MXU matmul for the whole sequence, bias folded in,
    # staged through VMEM so per-step reads are aligned 8-row tiles.
    xp_ref[...] = (
        jnp.dot(x2d_ref[...], wx, preferred_element_type=jnp.float32) + b
    )

    # Hidden->gate rows pre-broadcast once (hoisted; broadcast_in_dim is not
    # CSE'd across loop iterations). The K = H = 3 recurrent contraction then
    # runs as broadcast-MACs on the VPU instead of an MXU matmul per step.
    u_rows = tuple(jnp.broadcast_to(u[k:k + 1, :], (Bp, G4)) for k in range(H))

    h = hc0_ref[0]                         # (Bp, GB); lanes [0:H] meaningful, rest 0
    c = hc0_ref[1]

    # Static unroll over the (small) sequence length; (h, c) carried in vregs.
    for t in range(T):
        pre = xp_ref[t * Bp:(t + 1) * Bp, :]            # aligned (Bp=8)-row slice
        for k in range(H):
            pre = pre + h[:, k:k + 1] * u_rows[k]       # VPU broadcast-MAC
        # Each gate lives in its own 128-lane block -> aligned slices only.
        i_g = jax.nn.sigmoid(pre[:, 0 * GB:1 * GB])
        f_g = jax.nn.sigmoid(pre[:, 1 * GB:2 * GB])
        o_g = jax.nn.sigmoid(pre[:, 2 * GB:3 * GB])
        g_g = jnp.tanh(pre[:, 3 * GB:4 * GB])
        c = f_g * c + i_g * g_g
        h = o_g * jnp.tanh(c)
        hs_ref[t * Bp:(t + 1) * Bp, :] = h              # aligned 8-row store

    hcT_ref[0] = h
    hcT_ref[1] = c

    # Epilogue: single (T*Bp, GB) @ (GB, O) matmul + bias for the Linear head
    # (padded lanes of hs / padded rows of wl are zero, so they contribute 0).
    wl = lp_ref[0:GB, :]
    bl = lp_ref[GB:GB + 1, :]
    y = jnp.dot(hs_ref[...], wl, preferred_element_type=jnp.float32) + bl
    y_ref[...] = y.astype(y_ref.dtype)


@jax.jit
def lstm_simple_forward(x, h0, c0, gparams, lparams):
    """Pallas forward of LSTMSimple. x: (T, B, D) -> (y (T, B, O), (h_T, c_T))."""
    T, B, D = x.shape
    H = h0.shape[1]
    O = lparams.shape[1]
    GB = GATE_BLOCK
    Bp = ((B + SUBLANE - 1) // SUBLANE) * SUBLANE   # 5 -> 8: sublane-align batch

    # Wrapper-side layout plumbing: zero-pad batch rows and lane-pad states.
    x_pad = jnp.zeros((T, Bp, D), jnp.float32).at[:, :B, :].set(x)
    x2d = x_pad.reshape(T * Bp, D)
    hc0 = jnp.zeros((2, Bp, GB), jnp.float32)
    hc0 = hc0.at[0, :B, :H].set(h0).at[1, :B, :H].set(c0)

    vmem = pl.BlockSpec(memory_space=pltpu.MemorySpace.VMEM)
    kernel = functools.partial(
        _lstm_linear_kernel, batch=Bp, hidden=H, in_dim=D, seq=T)

    y2d, hcT = pl.pallas_call(
        kernel,
        out_shape=(
            jax.ShapeDtypeStruct((T * Bp, O), jnp.float32),
            jax.ShapeDtypeStruct((2, Bp, GB), jnp.float32),
        ),
        in_specs=[vmem, vmem, vmem, vmem],
        out_specs=(vmem, vmem),
        scratch_shapes=[
            pltpu.VMEM((T * Bp, 4 * GB), jnp.float32),   # hoisted input projection
            pltpu.VMEM((T * Bp, GB), jnp.float32),       # stacked hidden states
        ],
    )(x2d, hc0, gparams, lparams)

    y = y2d.reshape(T, Bp, O)[:, :B, :]
    h_n = hcT[0, :B, :H]
    c_n = hcT[1, :B, :H]
    # TODO(synk): PyTorch module mutates self.hidden / self.state_* in forward;
    # here the new state is returned purely and carrying it is the caller's job.
    return y, (h_n, c_n)


def init_raw_params(key, input_dim, hidden_dim, output_dim):
    """nn.LSTM / nn.Linear native-layout params (uniform +-1/sqrt(H))."""
    ks = jax.random.split(key, 6)
    H = hidden_dim
    bound = 1.0 / jnp.sqrt(hidden_dim)
    return dict(
        w_ih=jax.random.uniform(ks[0], (4 * H, input_dim), jnp.float32, -bound, bound),
        w_hh=jax.random.uniform(ks[1], (4 * H, H), jnp.float32, -bound, bound),
        b_ih=jax.random.uniform(ks[2], (4 * H,), jnp.float32, -bound, bound),
        b_hh=jax.random.uniform(ks[3], (4 * H,), jnp.float32, -bound, bound),
        w_lin=jax.random.uniform(ks[4], (output_dim, H), jnp.float32, -bound, bound),
        b_lin=jax.random.uniform(ks[5], (output_dim,), jnp.float32, -bound, bound),
    )


def pack_params(raw, input_dim, hidden_dim, output_dim):
    """PyTorch-layout params -> packed, gate-blocked Pallas operands.

    PyTorch gate row order is [i, f, g, o]; the kernel uses blocks [i, f, o, g]
    (three sigmoid gates first, tanh(g) last), each in its own 128-lane block.
    """
    D, H, O, GB = input_dim, hidden_dim, output_dim, GATE_BLOCK
    order = (0, 1, 3, 2)   # kernel block j  <-  PyTorch gate index

    def place(w_4h, n_rows):
        out = jnp.zeros((n_rows, 4 * GB), jnp.float32)
        for j, src in enumerate(order):
            blk = w_4h[src * H:(src + 1) * H, :].T           # (n_rows, H)
            out = out.at[:, j * GB:j * GB + H].set(blk)
        return out

    gparams = jnp.concatenate([
        place(raw["w_ih"], D),                               # Wx  (D, 4GB)
        place(raw["w_hh"], H),                               # U   (H, 4GB)
        place((raw["b_ih"] + raw["b_hh"])[:, None], 1),      # b   (1, 4GB)
    ], axis=0)

    lparams = jnp.zeros((GB + 1, O), jnp.float32)
    lparams = lparams.at[:H, :].set(raw["w_lin"].T)          # (H, O) lane-padded
    lparams = lparams.at[GB, :].set(raw["b_lin"])
    return gparams, lparams


def reference_forward(x, h0, c0, raw):
    """Pure-JAX reference in native PyTorch layout (gate order [i, f, g, o])."""
    H = h0.shape[1]
    w_ih, w_hh = raw["w_ih"], raw["w_hh"]
    b = raw["b_ih"] + raw["b_hh"]
    w_lin, b_lin = raw["w_lin"], raw["b_lin"]

    def step(carry, x_t):
        h, c = carry
        gates = x_t @ w_ih.T + h @ w_hh.T + b
        i = jax.nn.sigmoid(gates[:, 0 * H:1 * H])
        f = jax.nn.sigmoid(gates[:, 1 * H:2 * H])
        g = jnp.tanh(gates[:, 2 * H:3 * H])
        o = jax.nn.sigmoid(gates[:, 3 * H:4 * H])
        c = f * c + i * g
        h = o * jnp.tanh(c)
        y = h @ w_lin.T + b_lin
        return (h, c), y

    (hT, cT), ys = lax.scan(step, (h0, c0), x)
    return ys, (hT, cT)


if __name__ == "__main__":
    key = jax.random.PRNGKey(0)
    k_p, k_x, k_h, k_c = jax.random.split(key, 4)

    raw = init_raw_params(k_p, inputDim, hiddenDim, outputDim)
    gparams, lparams = pack_params(raw, inputDim, hiddenDim, outputDim)

    # inputs: (seq, batch, inputDim) as expected by nn.LSTM (batch_first=False)
    x = jax.random.normal(k_x, (seqLen, batchSize, inputDim), jnp.float32)
    # self.state_h = randn(1, B, H); self.state_c = rand(1, B, H)  (squeezed)
    h0 = jax.random.normal(k_h, (batchSize, hiddenDim), jnp.float32)
    c0 = jax.random.uniform(k_c, (batchSize, hiddenDim), jnp.float32)

    y, (h_n, c_n) = lstm_simple_forward(x, h0, c0, gparams, lparams)
    y = jax.block_until_ready(y)

    y_ref, (h_ref, c_ref) = reference_forward(x, h0, c0, raw)
    assert y.shape == (seqLen, batchSize, outputDim)
    assert jnp.allclose(y, y_ref, atol=1e-5, rtol=1e-5), "output mismatch vs reference"
    assert jnp.allclose(h_n, h_ref, atol=1e-5, rtol=1e-5), "h_T mismatch vs reference"
    assert jnp.allclose(c_n, c_ref, atol=1e-5, rtol=1e-5), "c_T mismatch vs reference"

    print("KERNEL_OK")
</pallas_src>

<mosaic_0001>
module attributes {stable_mosaic.version = 11 : i64} {
  func.func @_lstm_linear_kernel(%arg0: memref<64x10xf32, #tpu.memory_space<vmem>>, %arg1: memref<2x8x128xf32, #tpu.memory_space<vmem>>, %arg2: memref<14x512xf32, #tpu.memory_space<vmem>>, %arg3: memref<129x1xf32, #tpu.memory_space<vmem>>, %arg4: memref<64x1xf32, #tpu.memory_space<vmem>>, %arg5: memref<2x8x128xf32, #tpu.memory_space<vmem>>, %arg6: memref<64x512xf32, #tpu.memory_space<vmem>>, %arg7: memref<64x128xf32, #tpu.memory_space<vmem>>) attributes {dimension_semantics = [], scalar_prefetch = 0 : i64, scratch_operands = 2 : i64, tpu.core_type = #tpu.core_type<tc>} {
    %c0 = arith.constant 0 : index
    %c0_0 = arith.constant 0 : index
    %0 = vector.load %arg2[%c0, %c0_0] : memref<14x512xf32, #tpu.memory_space<vmem>>, vector<10x512xf32>
    %c10 = arith.constant 10 : index
    %c0_1 = arith.constant 0 : index
    %1 = vector.load %arg2[%c10, %c0_1] : memref<14x512xf32, #tpu.memory_space<vmem>>, vector<3x512xf32>
    %c13 = arith.constant 13 : index
    %c0_2 = arith.constant 0 : index
    %2 = vector.load %arg2[%c13, %c0_2] : memref<14x512xf32, #tpu.memory_space<vmem>>, vector<1x512xf32>
    %c0_3 = arith.constant 0 : index
    %c0_4 = arith.constant 0 : index
    %3 = vector.load %arg0[%c0_3, %c0_4] : memref<64x10xf32, #tpu.memory_space<vmem>>, vector<64x10xf32>
    %cst = arith.constant dense<0.000000e+00> : vector<64x512xf32>
    %4 = tpu.matmul %3, %0, %cst {dimension_numbers = #tpu.dot_dimension_numbers<[1], [0], [0], [1], [0, 0, 1, 1], [], []>} : vector<64x10xf32>, vector<10x512xf32>, vector<64x512xf32> -> vector<64x512xf32>
    %5 = vector.broadcast %2 : vector<1x512xf32> to vector<64x512xf32>
    %6 = arith.addf %4, %5 : vector<64x512xf32>
    %c0_5 = arith.constant 0 : index
    %c0_6 = arith.constant 0 : index
    %7 = vector.load %arg6[%c0_5, %c0_6] : memref<64x512xf32, #tpu.memory_space<vmem>>, vector<64x512xf32>
    tpu.vector_store %arg6[%c0_5, %c0_6], %6 {strides = array<i32>} : memref<64x512xf32, #tpu.memory_space<vmem>>, vector<64x512xf32>,
    %8 = vector.extract_strided_slice %1 {offsets = [0, 0], sizes = [1, 512], strides = [1, 1]} : vector<3x512xf32> to vector<1x512xf32>
    %9 = vector.shape_cast %8 : vector<1x512xf32> to vector<1x512xf32>
    %10 = vector.broadcast %9 : vector<1x512xf32> to vector<8x512xf32>
    %11 = vector.extract_strided_slice %1 {offsets = [1, 0], sizes = [1, 512], strides = [1, 1]} : vector<3x512xf32> to vector<1x512xf32>
    %12 = vector.shape_cast %11 : vector<1x512xf32> to vector<1x512xf32>
    %13 = vector.broadcast %12 : vector<1x512xf32> to vector<8x512xf32>
    %14 = vector.extract_strided_slice %1 {offsets = [2, 0], sizes = [1, 512], strides = [1, 1]} : vector<3x512xf32> to vector<1x512xf32>
    %15 = vector.shape_cast %14 : vector<1x512xf32> to vector<1x512xf32>
    %16 = vector.broadcast %15 : vector<1x512xf32> to vector<8x512xf32>
    %c0_7 = arith.constant 0 : index
    %c0_8 = arith.constant 0 : index
    %c0_9 = arith.constant 0 : index
    %17 = vector.load %arg1[%c0_7, %c0_8, %c0_9] : memref<2x8x128xf32, #tpu.memory_space<vmem>>, vector<1x8x128xf32>
    %18 = vector.shape_cast %17 : vector<1x8x128xf32> to vector<8x128xf32>
    %c1 = arith.constant 1 : index
    %c0_10 = arith.constant 0 : index
    %c0_11 = arith.constant 0 : index
    %19 = vector.load %arg1[%c1, %c0_10, %c0_11] : memref<2x8x128xf32, #tpu.memory_space<vmem>>, vector<1x8x128xf32>
    %20 = vector.shape_cast %19 : vector<1x8x128xf32> to vector<8x128xf32>
    %c0_12 = arith.constant 0 : index
    %c0_13 = arith.constant 0 : index
    %21 = vector.load %arg6[%c0_12, %c0_13] : memref<64x512xf32, #tpu.memory_space<vmem>>, vector<8x512xf32>
    %22 = vector.extract_strided_slice %18 {offsets = [0, 0], sizes = [8, 1], strides = [1, 1]} : vector<8x128xf32> to vector<8x1xf32>
    %23 = vector.broadcast %22 : vector<8x1xf32> to vector<8x512xf32>
    %24 = arith.mulf %23, %10 : vector<8x512xf32>
    %25 = arith.addf %21, %24 : vector<8x512xf32>
    %26 = vector.extract_strided_slice %18 {offsets = [0, 1], sizes = [8, 1], strides = [1, 1]} : vector<8x128xf32> to vector<8x1xf32>
    %27 = vector.broadcast %26 : vector<8x1xf32> to vector<8x512xf32>
    %28 = arith.mulf %27, %13 : vector<8x512xf32>
    %29 = arith.addf %25, %28 : vector<8x512xf32>
    %30 = vector.extract_strided_slice %18 {offsets = [0, 2], sizes = [8, 1], strides = [1, 1]} : vector<8x128xf32> to vector<8x1xf32>
    %31 = vector.broadcast %30 : vector<8x1xf32> to vector<8x512xf32>
    %32 = arith.mulf %31, %16 : vector<8x512xf32>
    %33 = arith.addf %29, %32 : vector<8x512xf32>
    %34 = vector.extract_strided_slice %33 {offsets = [0, 0], sizes = [8, 128], strides = [1, 1]} : vector<8x512xf32> to vector<8x128xf32>
    %35 = arith.negf %34 : vector<8x128xf32>
    %36 = math.exp %35 : vector<8x128xf32>
    %cst_14 = arith.constant 1.000000e+00 : f32
    %37 = vector.broadcast %cst_14 : f32 to vector<8x128xf32>
    %38 = arith.addf %37, %36 : vector<8x128xf32>
    %39 = arith.divf %37, %38 : vector<8x128xf32>
    %40 = vector.extract_strided_slice %33 {offsets = [0, 128], sizes = [8, 128], strides = [1, 1]} : vector<8x512xf32> to vector<8x128xf32>
    %41 = arith.negf %40 : vector<8x128xf32>
    %42 = math.exp %41 : vector<8x128xf32>
    %cst_15 = arith.constant 1.000000e+00 : f32
    %43 = vector.broadcast %cst_15 : f32 to vector<8x128xf32>
    %44 = arith.addf %43, %42 : vector<8x128xf32>
    %45 = arith.divf %43, %44 : vector<8x128xf32>
    %46 = vector.extract_strided_slice %33 {offsets = [0, 256], sizes = [8, 128], strides = [1, 1]} : vector<8x512xf32> to vector<8x128xf32>
    %47 = arith.negf %46 : vector<8x128xf32>
    %48 = math.exp %47 : vector<8x128xf32>
    %cst_16 = arith.constant 1.000000e+00 : f32
    %49 = vector.broadcast %cst_16 : f32 to vector<8x128xf32>
    %50 = arith.addf %49, %48 : vector<8x128xf32>
    %51 = arith.divf %49, %50 : vector<8x128xf32>
    %52 = vector.extract_strided_slice %33 {offsets = [0, 384], sizes = [8, 128], strides = [1, 1]} : vector<8x512xf32> to vector<8x128xf32>
    %53 = math.tanh %52 : vector<8x128xf32>
    %54 = arith.mulf %45, %20 : vector<8x128xf32>
    %55 = arith.mulf %39, %53 : vector<8x128xf32>
    %56 = arith.addf %54, %55 : vector<8x128xf32>
    %57 = math.tanh %56 : vector<8x128xf32>
    %58 = arith.mulf %51, %57 : vector<8x128xf32>
    %c0_17 = arith.constant 0 : index
    %c0_18 = arith.constant 0 : index
    %59 = vector.load %arg7[%c0_17, %c0_18] : memref<64x128xf32, #tpu.memory_space<vmem>>, vector<8x128xf32>
    tpu.vector_store %arg7[%c0_17, %c0_18], %58 {strides = array<i32>} : memref<64x128xf32, #tpu.memory_space<vmem>>, vector<8x128xf32>,
    %c8 = arith.constant 8 : index
    %c0_19 = arith.constant 0 : index
    %60 = vector.load %arg6[%c8, %c0_19] : memref<64x512xf32, #tpu.memory_space<vmem>>, vector<8x512xf32>
    %61 = vector.extract_strided_slice %58 {offsets = [0, 0], sizes = [8, 1], strides = [1, 1]} : vector<8x128xf32> to vector<8x1xf32>
    %62 = vector.broadcast %61 : vector<8x1xf32> to vector<8x512xf32>
    %63 = arith.mulf %62, %10 : vector<8x512xf32>
    %64 = arith.addf %60, %63 : vector<8x512xf32>
    %65 = vector.extract_strided_slice %58 {offsets = [0, 1], sizes = [8, 1], strides = [1, 1]} : vector<8x128xf32> to vector<8x1xf32>
    %66 = vector.broadcast %65 : vector<8x1xf32> to vector<8x512xf32>
    %67 = arith.mulf %66, %13 : vector<8x512xf32>
    %68 = arith.addf %64, %67 : vector<8x512xf32>
    %69 = vector.extract_strided_slice %58 {offsets = [0, 2], sizes = [8, 1], strides = [1, 1]} : vector<8x128xf32> to vector<8x1xf32>
    %70 = vector.broadcast %69 : vector<8x1xf32> to vector<8x512xf32>
    %71 = arith.mulf %70, %16 : vector<8x512xf32>
    %72 = arith.addf %68, %71 : vector<8x512xf32>
    %73 = vector.extract_strided_slice %72 {offsets = [0, 0], sizes = [8, 128], strides = [1, 1]} : vector<8x512xf32> to vector<8x128xf32>
    %74 = arith.negf %73 : vector<8x128xf32>
    %75 = math.exp %74 : vector<8x128xf32>
    %cst_20 = arith.constant 1.000000e+00 : f32
    %76 = vector.broadcast %cst_20 : f32 to vector<8x128xf32>
    %77 = arith.addf %76, %75 : vector<8x128xf32>
    %78 = arith.divf %76, %77 : vector<8x128xf32>
    %79 = vector.extract_strided_slice %72 {offsets = [0, 128], sizes = [8, 128], strides = [1, 1]} : vector<8x512xf32> to vector<8x128xf32>
    %80 = arith.negf %79 : vector<8x128xf32>
    %81 = math.exp %80 : vector<8x128xf32>
    %cst_21 = arith.constant 1.000000e+00 : f32
    %82 = vector.broadcast %cst_21 : f32 to vector<8x128xf32>
    %83 = arith.addf %82, %81 : vector<8x128xf32>
    %84 = arith.divf %82, %83 : vector<8x128xf32>
    %85 = vector.extract_strided_slice %72 {offsets = [0, 256], sizes = [8, 128], strides = [1, 1]} : vector<8x512xf32> to vector<8x128xf32>
    %86 = arith.negf %85 : vector<8x128xf32>
    %87 = math.exp %86 : vector<8x128xf32>
    %cst_22 = arith.constant 1.000000e+00 : f32
    %88 = vector.broadcast %cst_22 : f32 to vector<8x128xf32>
    %89 = arith.addf %88, %87 : vector<8x128xf32>
    %90 = arith.divf %88, %89 : vector<8x128xf32>
    %91 = vector.extract_strided_slice %72 {offsets = [0, 384], sizes = [8, 128], strides = [1, 1]} : vector<8x512xf32> to vector<8x128xf32>
    %92 = math.tanh %91 : vector<8x128xf32>
    %93 = arith.mulf %84, %56 : vector<8x128xf32>
    %94 = arith.mulf %78, %92 : vector<8x128xf32>
    %95 = arith.addf %93, %94 : vector<8x128xf32>
    %96 = math.tanh %95 : vector<8x128xf32>
    %97 = arith.mulf %90, %96 : vector<8x128xf32>
    %c8_23 = arith.constant 8 : index
    %c0_24 = arith.constant 0 : index
    %98 = vector.load %arg7[%c8_23, %c0_24] : memref<64x128xf32, #tpu.memory_space<vmem>>, vector<8x128xf32>
    tpu.vector_store %arg7[%c8_23, %c0_24], %97 {strides = array<i32>} : memref<64x128xf32, #tpu.memory_space<vmem>>, vector<8x128xf32>,
    %c16 = arith.constant 16 : index
    %c0_25 = arith.constant 0 : index
    %99 = vector.load %arg6[%c16, %c0_25] : memref<64x512xf32, #tpu.memory_space<vmem>>, vector<8x512xf32>
    %100 = vector.extract_strided_slice %97 {offsets = [0, 0], sizes = [8, 1], strides = [1, 1]} : vector<8x128xf32> to vector<8x1xf32>
    %101 = vector.broadcast %100 : vector<8x1xf32> to vector<8x512xf32>
    %102 = arith.mulf %101, %10 : vector<8x512xf32>
    %103 = arith.addf %99, %102 : vector<8x512xf32>
    %104 = vector.extract_strided_slice %97 {offsets = [0, 1], sizes = [8, 1], strides = [1, 1]} : vector<8x128xf32> to vector<8x1xf32>
    %105 = vector.broadcast %104 : vector<8x1xf32> to vector<8x512xf32>
    %106 = arith.mulf %105, %13 : vector<8x512xf32>
    %107 = arith.addf %103, %106 : vector<8x512xf32>
    %108 = vector.extract_strided_slice %97 {offsets = [0, 2], sizes = [8, 1], strides = [1, 1]} : vector<8x128xf32> to vector<8x1xf32>
    %109 = vector.broadcast %108 : vector<8x1xf32> to vector<8x512xf32>
    %110 = arith.mulf %109, %16 : vector<8x512xf32>
    %111 = arith.addf %107, %110 : vector<8x512xf32>
    %112 = vector.extract_strided_slice %111 {offsets = [0, 0], sizes = [8, 128], strides = [1, 1]} : vector<8x512xf32> to vector<8x128xf32>
    %113 = arith.negf %112 : vector<8x128xf32>
    %114 = math.exp %113 : vector<8x128xf32>
    %cst_26 = arith.constant 1.000000e+00 : f32
    %115 = vector.broadcast %cst_26 : f32 to vector<8x128xf32>
    %116 = arith.addf %115, %114 : vector<8x128xf32>
    %117 = arith.divf %115, %116 : vector<8x128xf32>
    %118 = vector.extract_strided_slice %111 {offsets = [0, 128], sizes = [8, 128], strides = [1, 1]} : vector<8x512xf32> to vector<8x128xf32>
    %119 = arith.negf %118 : vector<8x128xf32>
    %120 = math.exp %119 : vector<8x128xf32>
    %cst_27 = arith.constant 1.000000e+00 : f32
    %121 = vector.broadcast %cst_27 : f32 to vector<8x128xf32>
    %122 = arith.addf %121, %120 : vector<8x128xf32>
    %123 = arith.divf %121, %122 : vector<8x128xf32>
    %124 = vector.extract_strided_slice %111 {offsets = [0, 256], sizes = [8, 128], strides = [1, 1]} : vector<8x512xf32> to vector<8x128xf32>
    %125 = arith.negf %124 : vector<8x128xf32>
    %126 = math.exp %125 : vector<8x128xf32>
    %cst_28 = arith.constant 1.000000e+00 : f32
    %127 = vector.broadcast %cst_28 : f32 to vector<8x128xf32>
    %128 = arith.addf %127, %126 : vector<8x128xf32>
    %129 = arith.divf %127, %128 : vector<8x128xf32>
    %130 = vector.extract_strided_slice %111 {offsets = [0, 384], sizes = [8, 128], strides = [1, 1]} : vector<8x512xf32> to vector<8x128xf32>
    %131 = math.tanh %130 : vector<8x128xf32>
    %132 = arith.mulf %123, %95 : vector<8x128xf32>
    %133 = arith.mulf %117, %131 : vector<8x128xf32>
    %134 = arith.addf %132, %133 : vector<8x128xf32>
    %135 = math.tanh %134 : vector<8x128xf32>
    %136 = arith.mulf %129, %135 : vector<8x128xf32>
    %c16_29 = arith.constant 16 : index
    %c0_30 = arith.constant 0 : index
    %137 = vector.load %arg7[%c16_29, %c0_30] : memref<64x128xf32, #tpu.memory_space<vmem>>, vector<8x128xf32>
    tpu.vector_store %arg7[%c16_29, %c0_30], %136 {strides = array<i32>} : memref<64x128xf32, #tpu.memory_space<vmem>>, vector<8x128xf32>,
    %c24 = arith.constant 24 : index
    %c0_31 = arith.constant 0 : index
    %138 = vector.load %arg6[%c24, %c0_31] : memref<64x512xf32, #tpu.memory_space<vmem>>, vector<8x512xf32>
    %139 = vector.extract_strided_slice %136 {offsets = [0, 0], sizes = [8, 1], strides = [1, 1]} : vector<8x128xf32> to vector<8x1xf32>
    %140 = vector.broadcast %139 : vector<8x1xf32> to vector<8x512xf32>
    %141 = arith.mulf %140, %10 : vector<8x512xf32>
    %142 = arith.addf %138, %141 : vector<8x512xf32>
    %143 = vector.extract_strided_slice %136 {offsets = [0, 1], sizes = [8, 1], strides = [1, 1]} : vector<8x128xf32> to vector<8x1xf32>
    %144 = vector.broadcast %143 : vector<8x1xf32> to vector<8x512xf32>
    %145 = arith.mulf %144, %13 : vector<8x512xf32>
    %146 = arith.addf %142, %145 : vector<8x512xf32>
    %147 = vector.extract_strided_slice %136 {offsets = [0, 2], sizes = [8, 1], strides = [1, 1]} : vector<8x128xf32> to vector<8x1xf32>
    %148 = vector.broadcast %147 : vector<8x1xf32> to vector<8x512xf32>
    %149 = arith.mulf %148, %16 : vector<8x512xf32>
    %150 = arith.addf %146, %149 : vector<8x512xf32>
    %151 = vector.extract_strided_slice %150 {offsets = [0, 0], sizes = [8, 128], strides = [1, 1]} : vector<8x512xf32> to vector<8x128xf32>
    %152 = arith.negf %151 : vector<8x128xf32>
    %153 = math.exp %152 : vector<8x128xf32>
    %cst_32 = arith.constant 1.000000e+00 : f32
    %154 = vector.broadcast %cst_32 : f32 to vector<8x128xf32>
    %155 = arith.addf %154, %153 : vector<8x128xf32>
    %156 = arith.divf %154, %155 : vector<8x128xf32>
    %157 = vector.extract_strided_slice %150 {offsets = [0, 128], sizes = [8, 128], strides = [1, 1]} : vector<8x512xf32> to vector<8x128xf32>
    %158 = arith.negf %157 : vector<8x128xf32>
    %159 = math.exp %158 : vector<8x128xf32>
    %cst_33 = arith.constant 1.000000e+00 : f32
    %160 = vector.broadcast %cst_33 : f32 to vector<8x128xf32>
    %161 = arith.addf %160, %159 : vector<8x128xf32>
    %162 = arith.divf %160, %161 : vector<8x128xf32>
    %163 = vector.extract_strided_slice %150 {offsets = [0, 256], sizes = [8, 128], strides = [1, 1]} : vector<8x512xf32> to vector<8x128xf32>
    %164 = arith.negf %163 : vector<8x128xf32>
    %165 = math.exp %164 : vector<8x128xf32>
    %cst_34 = arith.constant 1.000000e+00 : f32
    %166 = vector.broadcast %cst_34 : f32 to vector<8x128xf32>
    %167 = arith.addf %166, %165 : vector<8x128xf32>
    %168 = arith.divf %166, %167 : vector<8x128xf32>
    %169 = vector.extract_strided_slice %150 {offsets = [0, 384], sizes = [8, 128], strides = [1, 1]} : vector<8x512xf32> to vector<8x128xf32>
    %170 = math.tanh %169 : vector<8x128xf32>
    %171 = arith.mulf %162, %134 : vector<8x128xf32>
    %172 = arith.mulf %156, %170 : vector<8x128xf32>
    %173 = arith.addf %171, %172 : vector<8x128xf32>
    %174 = math.tanh %173 : vector<8x128xf32>
    %175 = arith.mulf %168, %174 : vector<8x128xf32>
    %c24_35 = arith.constant 24 : index
    %c0_36 = arith.constant 0 : index
    %176 = vector.load %arg7[%c24_35, %c0_36] : memref<64x128xf32, #tpu.memory_space<vmem>>, vector<8x128xf32>
    tpu.vector_store %arg7[%c24_35, %c0_36], %175 {strides = array<i32>} : memref<64x128xf32, #tpu.memory_space<vmem>>, vector<8x128xf32>,
    %c32 = arith.constant 32 : index
    %c0_37 = arith.constant 0 : index
    %177 = vector.load %arg6[%c32, %c0_37] : memref<64x512xf32, #tpu.memory_space<vmem>>, vector<8x512xf32>
    %178 = vector.extract_strided_slice %175 {offsets = [0, 0], sizes = [8, 1], strides = [1, 1]} : vector<8x128xf32> to vector<8x1xf32>
    %179 = vector.broadcast %178 : vector<8x1xf32> to vector<8x512xf32>
    %180 = arith.mulf %179, %10 : vector<8x512xf32>
    %181 = arith.addf %177, %180 : vector<8x512xf32>
    %182 = vector.extract_strided_slice %175 {offsets = [0, 1], sizes = [8, 1], strides = [1, 1]} : vector<8x128xf32> to vector<8x1xf32>
    %183 = vector.broadcast %182 : vector<8x1xf32> to vector<8x512xf32>
    %184 = arith.mulf %183, %13 : vector<8x512xf32>
    %185 = arith.addf %181, %184 : vector<8x512xf32>
    %186 = vector.extract_strided_slice %175 {offsets = [0, 2], sizes = [8, 1], strides = [1, 1]} : vector<8x128xf32> to vector<8x1xf32>
    %187 = vector.broadcast %186 : vector<8x1xf32> to vector<8x512xf32>
    %188 = arith.mulf %187, %16 : vector<8x512xf32>
    %189 = arith.addf %185, %188 : vector<8x512xf32>
    %190 = vector.extract_strided_slice %189 {offsets = [0, 0], sizes = [8, 128], strides = [1, 1]} : vector<8x512xf32> to vector<8x128xf32>
    %191 = arith.negf %190 : vector<8x128xf32>
    %192 = math.exp %191 : vector<8x128xf32>
    %cst_38 = arith.constant 1.000000e+00 : f32
    %193 = vector.broadcast %cst_38 : f32 to vector<8x128xf32>
    %194 = arith.addf %193, %192 : vector<8x128xf32>
    %195 = arith.divf %193, %194 : vector<8x128xf32>
    %196 = vector.extract_strided_slice %189 {offsets = [0, 128], sizes = [8, 128], strides = [1, 1]} : vector<8x512xf32> to vector<8x128xf32>
    %197 = arith.negf %196 : vector<8x128xf32>
    %198 = math.exp %197 : vector<8x128xf32>
    %cst_39 = arith.constant 1.000000e+00 : f32
    %199 = vector.broadcast %cst_39 : f32 to vector<8x128xf32>
    %200 = arith.addf %199, %198 : vector<8x128xf32>
    %201 = arith.divf %199, %200 : vector<8x128xf32>
    %202 = vector.extract_strided_slice %189 {offsets = [0, 256], sizes = [8, 128], strides = [1, 1]} : vector<8x512xf32> to vector<8x128xf32>
    %203 = arith.negf %202 : vector<8x128xf32>
    %204 = math.exp %203 : vector<8x128xf32>
    %cst_40 = arith.constant 1.000000e+00 : f32
    %205 = vector.broadcast %cst_40 : f32 to vector<8x128xf32>
    %206 = arith.addf %205, %204 : vector<8x128xf32>
    %207 = arith.divf %205, %206 : vector<8x128xf32>
    %208 = vector.extract_strided_slice %189 {offsets = [0, 384], sizes = [8, 128], strides = [1, 1]} : vector<8x512xf32> to vector<8x128xf32>
    %209 = math.tanh %208 : vector<8x128xf32>
    %210 = arith.mulf %201, %173 : vector<8x128xf32>
    %211 = arith.mulf %195, %209 : vector<8x128xf32>
    %212 = arith.addf %210, %211 : vector<8x128xf32>
    %213 = math.tanh %212 : vector<8x128xf32>
    %214 = arith.mulf %207, %213 : vector<8x128xf32>
    %c32_41 = arith.constant 32 : index
    %c0_42 = arith.constant 0 : index
    %215 = vector.load %arg7[%c32_41, %c0_42] : memref<64x128xf32, #tpu.memory_space<vmem>>, vector<8x128xf32>
    tpu.vector_store %arg7[%c32_41, %c0_42], %214 {strides = array<i32>} : memref<64x128xf32, #tpu.memory_space<vmem>>, vector<8x128xf32>,
    %c40 = arith.constant 40 : index
    %c0_43 = arith.constant 0 : index
    %216 = vector.load %arg6[%c40, %c0_43] : memref<64x512xf32, #tpu.memory_space<vmem>>, vector<8x512xf32>
    %217 = vector.extract_strided_slice %214 {offsets = [0, 0], sizes = [8, 1], strides = [1, 1]} : vector<8x128xf32> to vector<8x1xf32>
    %218 = vector.broadcast %217 : vector<8x1xf32> to vector<8x512xf32>
    %219 = arith.mulf %218, %10 : vector<8x512xf32>
    %220 = arith.addf %216, %219 : vector<8x512xf32>
    %221 = vector.extract_strided_slice %214 {offsets = [0, 1], sizes = [8, 1], strides = [1, 1]} : vector<8x128xf32> to vector<8x1xf32>
    %222 = vector.broadcast %221 : vector<8x1xf32> to vector<8x512xf32>
    %223 = arith.mulf %222, %13 : vector<8x512xf32>
    %224 = arith.addf %220, %223 : vector<8x512xf32>
    %225 = vector.extract_strided_slice %214 {offsets = [0, 2], sizes = [8, 1], strides = [1, 1]} : vector<8x128xf32> to vector<8x1xf32>
    %226 = vector.broadcast %225 : vector<8x1xf32> to vector<8x512xf32>
    %227 = arith.mulf %226, %16 : vector<8x512xf32>
    %228 = arith.addf %224, %227 : vector<8x512xf32>
    %229 = vector.extract_strided_slice %228 {offsets = [0, 0], sizes = [8, 128], strides = [1, 1]} : vector<8x512xf32> to vector<8x128xf32>
    %230 = arith.negf %229 : vector<8x128xf32>
    %231 = math.exp %230 : vector<8x128xf32>
    %cst_44 = arith.constant 1.000000e+00 : f32
    %232 = vector.broadcast %cst_44 : f32 to vector<8x128xf32>
    %233 = arith.addf %232, %231 : vector<8x128xf32>
    %234 = arith.divf %232, %233 : vector<8x128xf32>
    %235 = vector.extract_strided_slice %228 {offsets = [0, 128], sizes = [8, 128], strides = [1, 1]} : vector<8x512xf32> to vector<8x128xf32>
    %236 = arith.negf %235 : vector<8x128xf32>
    %237 = math.exp %236 : vector<8x128xf32>
    %cst_45 = arith.constant 1.000000e+00 : f32
    %238 = vector.broadcast %cst_45 : f32 to vector<8x128xf32>
    %239 = arith.addf %238, %237 : vector<8x128xf32>
    %240 = arith.divf %238, %239 : vector<8x128xf32>
    %241 = vector.extract_strided_slice %228 {offsets = [0, 256], sizes = [8, 128], strides = [1, 1]} : vector<8x512xf32> to vector<8x128xf32>
    %242 = arith.negf %241 : vector<8x128xf32>
    %243 = math.exp %242 : vector<8x128xf32>
    %cst_46 = arith.constant 1.000000e+00 : f32
    %244 = vector.broadcast %cst_46 : f32 to vector<8x128xf32>
    %245 = arith.addf %244, %243 : vector<8x128xf32>
    %246 = arith.divf %244, %245 : vector<8x128xf32>
    %247 = vector.extract_strided_slice %228 {offsets = [0, 384], sizes = [8, 128], strides = [1, 1]} : vector<8x512xf32> to vector<8x128xf32>
    %248 = math.tanh %247 : vector<8x128xf32>
    %249 = arith.mulf %240, %212 : vector<8x128xf32>
    %250 = arith.mulf %234, %248 : vector<8x128xf32>
    %251 = arith.addf %249, %250 : vector<8x128xf32>
    %252 = math.tanh %251 : vector<8x128xf32>
    %253 = arith.mulf %246, %252 : vector<8x128xf32>
    %c40_47 = arith.constant 40 : index
    %c0_48 = arith.constant 0 : index
    %254 = vector.load %arg7[%c40_47, %c0_48] : memref<64x128xf32, #tpu.memory_space<vmem>>, vector<8x128xf32>
    tpu.vector_store %arg7[%c40_47, %c0_48], %253 {strides = array<i32>} : memref<64x128xf32, #tpu.memory_space<vmem>>, vector<8x128xf32>,
    %c48 = arith.constant 48 : index
    %c0_49 = arith.constant 0 : index
    %255 = vector.load %arg6[%c48, %c0_49] : memref<64x512xf32, #tpu.memory_space<vmem>>, vector<8x512xf32>
    %256 = vector.extract_strided_slice %253 {offsets = [0, 0], sizes = [8, 1], strides = [1, 1]} : vector<8x128xf32> to vector<8x1xf32>
    %257 = vector.broadcast %256 : vector<8x1xf32> to vector<8x512xf32>
    %258 = arith.mulf %257, %10 : vector<8x512xf32>
    %259 = arith.addf %255, %258 : vector<8x512xf32>
    %260 = vector.extract_strided_slice %253 {offsets = [0, 1], sizes = [8, 1], strides = [1, 1]} : vector<8x128xf32> to vector<8x1xf32>
    %261 = vector.broadcast %260 : vector<8x1xf32> to vector<8x512xf32>
    %262 = arith.mulf %261, %13 : vector<8x512xf32>
    %263 = arith.addf %259, %262 : vector<8x512xf32>
    %264 = vector.extract_strided_slice %253 {offsets = [0, 2], sizes = [8, 1], strides = [1, 1]} : vector<8x128xf32> to vector<8x1xf32>
    %265 = vector.broadcast %264 : vector<8x1xf32> to vector<8x512xf32>
    %266 = arith.mulf %265, %16 : vector<8x512xf32>
    %267 = arith.addf %263, %266 : vector<8x512xf32>
    %268 = vector.extract_strided_slice %267 {offsets = [0, 0], sizes = [8, 128], strides = [1, 1]} : vector<8x512xf32> to vector<8x128xf32>
    %269 = arith.negf %268 : vector<8x128xf32>
    %270 = math.exp %269 : vector<8x128xf32>
    %cst_50 = arith.constant 1.000000e+00 : f32
    %271 = vector.broadcast %cst_50 : f32 to vector<8x128xf32>
    %272 = arith.addf %271, %270 : vector<8x128xf32>
    %273 = arith.divf %271, %272 : vector<8x128xf32>
    %274 = vector.extract_strided_slice %267 {offsets = [0, 128], sizes = [8, 128], strides = [1, 1]} : vector<8x512xf32> to vector<8x128xf32>
    %275 = arith.negf %274 : vector<8x128xf32>
    %276 = math.exp %275 : vector<8x128xf32>
    %cst_51 = arith.constant 1.000000e+00 : f32
    %277 = vector.broadcast %cst_51 : f32 to vector<8x128xf32>
    %278 = arith.addf %277, %276 : vector<8x128xf32>
    %279 = arith.divf %277, %278 : vector<8x128xf32>
    %280 = vector.extract_strided_slice %267 {offsets = [0, 256], sizes = [8, 128], strides = [1, 1]} : vector<8x512xf32> to vector<8x128xf32>
    %281 = arith.negf %280 : vector<8x128xf32>
    %282 = math.exp %281 : vector<8x128xf32>
    %cst_52 = arith.constant 1.000000e+00 : f32
    %283 = vector.broadcast %cst_52 : f32 to vector<8x128xf32>
    %284 = arith.addf %283, %282 : vector<8x128xf32>
    %285 = arith.divf %283, %284 : vector<8x128xf32>
    %286 = vector.extract_strided_slice %267 {offsets = [0, 384], sizes = [8, 128], strides = [1, 1]} : vector<8x512xf32> to vector<8x128xf32>
    %287 = math.tanh %286 : vector<8x128xf32>
    %288 = arith.mulf %279, %251 : vector<8x128xf32>
    %289 = arith.mulf %273, %287 : vector<8x128xf32>
    %290 = arith.addf %288, %289 : vector<8x128xf32>
    %291 = math.tanh %290 : vector<8x128xf32>
    %292 = arith.mulf %285, %291 : vector<8x128xf32>
    %c48_53 = arith.constant 48 : index
    %c0_54 = arith.constant 0 : index
    %293 = vector.load %arg7[%c48_53, %c0_54] : memref<64x128xf32, #tpu.memory_space<vmem>>, vector<8x128xf32>
    tpu.vector_store %arg7[%c48_53, %c0_54], %292 {strides = array<i32>} : memref<64x128xf32, #tpu.memory_space<vmem>>, vector<8x128xf32>,
    %c56 = arith.constant 56 : index
    %c0_55 = arith.constant 0 : index
    %294 = vector.load %arg6[%c56, %c0_55] : memref<64x512xf32, #tpu.memory_space<vmem>>, vector<8x512xf32>
    %295 = vector.extract_strided_slice %292 {offsets = [0, 0], sizes = [8, 1], strides = [1, 1]} : vector<8x128xf32> to vector<8x1xf32>
    %296 = vector.broadcast %295 : vector<8x1xf32> to vector<8x512xf32>
    %297 = arith.mulf %296, %10 : vector<8x512xf32>
    %298 = arith.addf %294, %297 : vector<8x512xf32>
    %299 = vector.extract_strided_slice %292 {offsets = [0, 1], sizes = [8, 1], strides = [1, 1]} : vector<8x128xf32> to vector<8x1xf32>
    %300 = vector.broadcast %299 : vector<8x1xf32> to vector<8x512xf32>
    %301 = arith.mulf %300, %13 : vector<8x512xf32>
    %302 = arith.addf %298, %301 : vector<8x512xf32>
    %303 = vector.extract_strided_slice %292 {offsets = [0, 2], sizes = [8, 1], strides = [1, 1]} : vector<8x128xf32> to vector<8x1xf32>
    %304 = vector.broadcast %303 : vector<8x1xf32> to vector<8x512xf32>
    %305 = arith.mulf %304, %16 : vector<8x512xf32>
    %306 = arith.addf %302, %305 : vector<8x512xf32>
    %307 = vector.extract_strided_slice %306 {offsets = [0, 0], sizes = [8, 128], strides = [1, 1]} : vector<8x512xf32> to vector<8x128xf32>
    %308 = arith.negf %307 : vector<8x128xf32>
    %309 = math.exp %308 : vector<8x128xf32>
    %cst_56 = arith.constant 1.000000e+00 : f32
    %310 = vector.broadcast %cst_56 : f32 to vector<8x128xf32>
    %311 = arith.addf %310, %309 : vector<8x128xf32>
    %312 = arith.divf %310, %311 : vector<8x128xf32>
    %313 = vector.extract_strided_slice %306 {offsets = [0, 128], sizes = [8, 128], strides = [1, 1]} : vector<8x512xf32> to vector<8x128xf32>
    %314 = arith.negf %313 : vector<8x128xf32>
    %315 = math.exp %314 : vector<8x128xf32>
    %cst_57 = arith.constant 1.000000e+00 : f32
    %316 = vector.broadcast %cst_57 : f32 to vector<8x128xf32>
    %317 = arith.addf %316, %315 : vector<8x128xf32>
    %318 = arith.divf %316, %317 : vector<8x128xf32>
    %319 = vector.extract_strided_slice %306 {offsets = [0, 256], sizes = [8, 128], strides = [1, 1]} : vector<8x512xf32> to vector<8x128xf32>
    %320 = arith.negf %319 : vector<8x128xf32>
    %321 = math.exp %320 : vector<8x128xf32>
    %cst_58 = arith.constant 1.000000e+00 : f32
    %322 = vector.broadcast %cst_58 : f32 to vector<8x128xf32>
    %323 = arith.addf %322, %321 : vector<8x128xf32>
    %324 = arith.divf %322, %323 : vector<8x128xf32>
    %325 = vector.extract_strided_slice %306 {offsets = [0, 384], sizes = [8, 128], strides = [1, 1]} : vector<8x512xf32> to vector<8x128xf32>
    %326 = math.tanh %325 : vector<8x128xf32>
    %327 = arith.mulf %318, %290 : vector<8x128xf32>
    %328 = arith.mulf %312, %326 : vector<8x128xf32>
    %329 = arith.addf %327, %328 : vector<8x128xf32>
    %330 = math.tanh %329 : vector<8x128xf32>
    %331 = arith.mulf %324, %330 : vector<8x128xf32>
    %c56_59 = arith.constant 56 : index
    %c0_60 = arith.constant 0 : index
    %332 = vector.load %arg7[%c56_59, %c0_60] : memref<64x128xf32, #tpu.memory_space<vmem>>, vector<8x128xf32>
    tpu.vector_store %arg7[%c56_59, %c0_60], %331 {strides = array<i32>} : memref<64x128xf32, #tpu.memory_space<vmem>>, vector<8x128xf32>,
    %c0_61 = arith.constant 0 : index
    %c0_62 = arith.constant 0 : index
    %c0_63 = arith.constant 0 : index
    %333 = vector.load %arg5[%c0_61, %c0_62, %c0_63] : memref<2x8x128xf32, #tpu.memory_space<vmem>>, vector<1x8x128xf32>
    %334 = vector.shape_cast %333 : vector<1x8x128xf32> to vector<8x128xf32>
    %335 = vector.shape_cast %331 : vector<8x128xf32> to vector<1x8x128xf32>
    tpu.vector_store %arg5[%c0_61, %c0_62, %c0_63], %335 {strides = array<i32>} : memref<2x8x128xf32, #tpu.memory_space<vmem>>, vector<1x8x128xf32>,
    %c1_64 = arith.constant 1 : index
    %c0_65 = arith.constant 0 : index
    %c0_66 = arith.constant 0 : index
    %336 = vector.load %arg5[%c1_64, %c0_65, %c0_66] : memref<2x8x128xf32, #tpu.memory_space<vmem>>, vector<1x8x128xf32>
    %337 = vector.shape_cast %336 : vector<1x8x128xf32> to vector<8x128xf32>
    %338 = vector.shape_cast %329 : vector<8x128xf32> to vector<1x8x128xf32>
    tpu.vector_store %arg5[%c1_64, %c0_65, %c0_66], %338 {strides = array<i32>} : memref<2x8x128xf32, #tpu.memory_space<vmem>>, vector<1x8x128xf32>,
    %c0_67 = arith.constant 0 : index
    %c0_68 = arith.constant 0 : index
    %339 = vector.load %arg3[%c0_67, %c0_68] : memref<129x1xf32, #tpu.memory_space<vmem>>, vector<128x1xf32>
    %c128 = arith.constant 128 : index
    %c0_69 = arith.constant 0 : index
    %340 = vector.load %arg3[%c128, %c0_69] : memref<129x1xf32, #tpu.memory_space<vmem>>, vector<1x1xf32>
    %c0_70 = arith.constant 0 : index
    %c0_71 = arith.constant 0 : index
    %341 = vector.load %arg7[%c0_70, %c0_71] : memref<64x128xf32, #tpu.memory_space<vmem>>, vector<64x128xf32>
    %cst_72 = arith.constant dense<0.000000e+00> : vector<64x1xf32>
    %342 = tpu.matmul %341, %339, %cst_72 {dimension_numbers = #tpu.dot_dimension_numbers<[1], [0], [0], [1], [0, 0, 1, 1], [], []>} : vector<64x128xf32>, vector<128x1xf32>, vector<64x1xf32> -> vector<64x1xf32>
    %343 = vector.broadcast %340 : vector<1x1xf32> to vector<64x1xf32>
    %344 = arith.addf %342, %343 : vector<64x1xf32>
    %c0_73 = arith.constant 0 : index
    %c0_74 = arith.constant 0 : index
    %345 = vector.load %arg4[%c0_73, %c0_74] : memref<64x1xf32, #tpu.memory_space<vmem>>, vector<64x1xf32>
    tpu.vector_store %arg4[%c0_73, %c0_74], %344 {strides = array<i32>} : memref<64x1xf32, #tpu.memory_space<vmem>>, vector<64x1xf32>,
    return
  }
}

</mosaic_0001>

<bundles_post_ra>
// kernel: lstm_simple_forward.1
= control target key start
LH: loop header
LB: loop body
LE: loop exit
PB: predicated region body
PF: predicated region fallthrough
CT: control target
= control target key end

     0   :  { %vm75_vm0 = vcmask 1041408   ;;  %v1459_v3 = vmov 0   ;;  %v1460_v4 = vmov 1   ;;  %vm50_vm1 = vcmask 80896   ;;  %s2001_s2 = inlined_call_operand.vmem [shape: f32[14,512], index: 2, kind: input, shape index: {}]   ;;  %s2002_s0 = inlined_call_operand.vmem [shape: f32[64,10], index: 0, kind: input, shape index: {}]   ;;  %s2003_s1 = inlined_call_operand.vmem [shape: f32[2,8,128], index: 1, kind: input, shape index: {}]   ;;  %s2004_s3 = inlined_call_operand.vmem [shape: f32[129,1], index: 3, kind: input, shape index: {}]   ;;  %s2005_s4 = inlined_call_operand.vmem [shape: f32[64,1], index: 4, kind: output, shape index: {0}]   ;;  %s2006_s5 = inlined_call_operand.vmem [shape: f32[2,8,128], index: 5, kind: output, shape index: {1}]  }
   0x1   :  { %v23_v0 = vld [vmem:[%s2001_s2 + $0x20] sm:$0x3]  ;;  %v25_v1 = vld [vmem:[%s2001_s2 + $0x30] sm:$0x3]  ;;  %1312 = vset.pattern.permute.xlu0 %v1459_v3  ;;  %1316 = vset.pattern.permute.xlu2 %v1460_v4  ;;  %v24_v9 = vld [vmem:[%s2001_s2 + $0x28] sm:$0x3] }
   0x2   :  { %v19_v2 = vld [vmem:[%s2001_s2] sm:$0xff]  ;;  %1227 = vmatpush.msk.msra.mxu0 %vm75_vm0, %v23_v0  ;;  %1289 = vmatpush.msk.msra.mxu1 %vm75_vm0, %v23_v0  ;;  %v21_v5 = vld [vmem:[%s2001_s2 + $0x10] sm:$0xff]  ;;  %v20_v11 = vld [vmem:[%s2001_s2 + $0x8] sm:$0xff]  ;;  %v1461_v14 = vmov 2   ;;  %vm1209_vm14 = vcmask 7168  }
   0x3   :  { %1290 = vmatpush.msk.msra.mxu3 %vm75_vm0, %v23_v0  ;;  %1245 = vmatpush.msk.msra.mxu2 %vm75_vm0, %v25_v1  ;;  %v33_v6 = vld [vmem:[%s2002_s0] sm:$0xff]  ;;  %v1521_v8 = vld [vmem:[%s2002_s0 + $0x30] sm:$0xff]  ;;  %v26_v12 = vld [vmem:[%s2001_s2 + $0x38] sm:$0x3] }
   0x4   :  { %v1516_v7 = vld [vmem:[%s2002_s0 + $0x20] sm:$0xff]  ;;  %103 = vmatpush.msra.mxu0 %v19_v2  ;;  %1291 = vmatpush.msra.mxu1 %v19_v2  ;;  %v22_v13 = vld [vmem:[%s2001_s2 + $0x18] sm:$0xff]  ;;  %v1550_v15 = vld [vmem:[%s2002_s0 + $0x28] sm:$0xff] }
   0x5   :  { %1292 = vmatpush.msra.mxu3 %v19_v2  ;;  %185 = vmatpush.msra.mxu2 %v21_v5  ;;  %v296_v10 = vld [vmem:[%s2003_s1] sm:$0xff]  ;;  %v1555_v16 = vld [vmem:[%s2002_s0 + $0x38] sm:$0xff]  ;;  %v29_v28 = vld [vmem:[%s2001_s2 + $0x30] sm:$0x1c] }
   0x6   :  { %1228 = vmatmul.msk.f32.vlgmr.msra.gmra.mxu0 %vm50_vm1, %v33_v6  ;;  %1232 = vmatmul.msk.f32.vlgmr.msra.gmra.mxu1 %vm50_vm1, %v1516_v7  ;;  %v27_v18 = vld [vmem:[%s2001_s2 + $0x20] sm:$0x1c]  ;;  %v1574_v19 = vld [vmem:[%s2001_s2 + $0x25] ss:$8 sm:$0xf]  ;;  %v1601_v34 = vperm.slane %v29_v28, 2 }
   0x7   :  { %1234 = vmatmul.msk.f32.vlgmr.msra.gmra.mxu3 %vm50_vm1, %v1521_v8  ;;  %1236 = vmatpush.msk.msrb.mxu1 %vm75_vm0, %v24_v9  ;;  %v1576_v20 = vperm.slane %v27_v18, 2  ;;  %v1579_v21 = vperm.slane %v1574_v19, 0  ;;  %v1581_v22 = vperm.slane %v27_v18, 3  ;;  %v1585_v24 = vperm.slane %v27_v18, 4  ;;  %v1157_v35 = vld [vmem:[%s2004_s3 + $0x78] sm:$0xff]  ;;  %v1156_v39 = vld [vmem:[%s2004_s3 + $0x70] sm:$0xff] }
   0x8   :  { %1246 = vmatmul.msk.f32.vlgmr.msra.gmra.mxu2 %vm50_vm1, %v33_v6  ;;  %305 = vperm.xlu0 %1312, %v296_v10   ;;  %v1606_v36 = vperm.slane %v29_v28, 3  ;;  %v1609_v38 = vperm.slane %v1574_v19, 2  ;;  %v1614_v40 = vperm.slane %v29_v28, 4  ;;  %v1155_v46 = vld [vmem:[%s2004_s3 + $0x68] sm:$0xff]  ;;  %v1154_v51 = vld [vmem:[%s2004_s3 + $0x60] sm:$0xff]  ;;  %v1153_v55 = vld [vmem:[%s2004_s3 + $0x58] sm:$0xff] }
   0x9   :  { %144 = vmatpush.msrb.mxu1 %v20_v11  ;;  %1254 = vmatpush.msk.msrb.mxu3 %vm75_vm0, %v26_v12  ;;  %v28_v50 = vld [vmem:[%s2001_s2 + $0x28] sm:$0x1c]  ;;  %v1647_v58 = vperm.slane %v1574_v19, 1  ;;  %v1152_v60 = vld [vmem:[%s2004_s3 + $0x50] sm:$0xff]  ;;  %v1150_v12 = vld [vmem:[%s2004_s3 + $0x40] sm:$0xff] }
   0xa   :  { %1314 = vset.pattern.permute.xlu1 %v1461_v14  ;;  %1168 = vmatpush.msrb.mxu0 %v1157_v35  ;;  %v34_v54 = vld [vmem:[%s2002_s0 + $0x8] sm:$0xff]  ;;  %v1644_v56 = vperm.slane %v28_v50, 3  ;;  %v1649_v59 = vperm.slane %v28_v50, 2  ;;  %v1656_v61 = vperm.slane %v28_v50, 4 }
   0xb   :  { %226 = vmatpush.msrb.mxu3 %v22_v13  ;;  %329 = vperm.xlu1 %1314, %v296_v10   ;;  %v1151_v1 = vld [vmem:[%s2004_s3 + $0x48] sm:$0xff] }
   0xc   :  { %1293 = vmatpush.msrb.mxu2 %v1157_v35  ;;  %1169 = vmatpush.msrb.mxu0 %v1156_v39  ;;  %v1696_v35 = vperm.slane %v1574_v19, 3 }
   0xe   :  { %1233 = vmatmul.msk.f32.gmra.mxu1 %vm50_vm1, %v1550_v15  ;;  %1294 = vmatpush.msrb.mxu2 %v1156_v39 }
   0xf   :  { %1235 = vmatmul.msk.f32.gmra.mxu3 %vm50_vm1, %v1555_v16  ;;  %1170 = vmatpush.msrb.mxu0 %v1155_v46 }
  0x10   :  { %1313 = vset.pattern.permute.xlu0 %v1460_v4  ;;  %1295 = vmatpush.msrb.mxu2 %v1155_v46  ;;  %v1145_v46 = vld [vmem:[%s2004_s3 + $0x18] sm:$0xff] }
  0x11   :  { %317 = vperm.xlu0 %1313, %v296_v10   ;;  %1171 = vmatpush.msrb.mxu0 %v1154_v51 }
  0x12   :  { %1296 = vmatpush.msrb.mxu2 %v1154_v51  ;;  %1229 = vmatmul.msk.f32.gmra.mxu0 %vm50_vm1, %v34_v54 }
  0x13   :  { %1315 = vset.pattern.permute.xlu1 %v1459_v3  ;;  %1247 = vmatmul.msk.f32.gmra.mxu2 %vm50_vm1, %v34_v54 }
  0x14   :  { %1172 = vmatpush.msrb.mxu0 %v1153_v55  ;;  %1297 = vmatpush.msrb.mxu2 %v1153_v55 }
  0x16   :  { %1237 = vmatmul.msk.f32.vlgmr.msrb.gmra.mxu1 %vm50_vm1, %v33_v6  ;;  %1173 = vmatpush.msrb.mxu0 %v1152_v60 }
  0x17   :  { %1255 = vmatmul.msk.f32.vlgmr.msrb.gmra.mxu3 %vm50_vm1, %v33_v6  ;;  %1298 = vmatpush.msrb.mxu2 %v1152_v60 }
  0x18   :  { %1174 = vmatpush.msrb.mxu0 %v1151_v1 }
  0x19   :  { %1319 = vset.pattern.permute.xlu0 %v1461_v14  ;;  %1299 = vmatpush.msrb.mxu2 %v1151_v1 }
  0x1a   :  { %1175 = vmatpush.msrb.mxu0 %v1150_v12 }
  0x1b   :  { %1300 = vmatpush.msrb.mxu2 %v1150_v12 }
  0x1e   :  { %1238 = vmatmul.msk.f32.gmra.mxu1 %vm50_vm1, %v34_v54 }
  0x1f   :  { %1256 = vmatmul.msk.f32.gmra.mxu3 %vm50_vm1, %v34_v54 }
  0x7a   :  { %v1566_v17 = vpop.permute.xlu0 %305 }
  0x7b   :  { %v308_v23 = vmul.f32 %v1566_v17, %v1576_v20  ;;  %v310_v43 = vmul.f32 %v1566_v17, %v1601_v34  ;;  %v309_v10 = vmul.f32 %v1566_v17, %v1649_v59 }
  0x7d   :  { %v1587_v25 = vpop.permute.xlu1 %329 }
  0x7e   :  { %v332_v33 = vmul.f32 %v1587_v25, %v1585_v24  ;;  %v334_v52 = vmul.f32 %v1587_v25, %v1614_v40  ;;  %v333_v13 = vmul.f32 %v1587_v25, %v1656_v61 }
  0x83   :  { %v105_v26 = vpop.f32.mrf.mxu0  ;;  %v1589_v27 = vpop.f32.mrf.mxu1 }
  0x84   :  { %v106_v29 = vadd.f32 %v105_v26, %v1579_v21  ;;  %v1595_v30 = vpop.permute.xlu0 %317  ;;  %v1149_v26 = vld [vmem:[%s2004_s3 + $0x38] sm:$0xff] }
  0x85   :  { %v320_v31 = vmul.f32 %v1595_v30, %v1581_v22  ;;  %v322_v47 = vmul.f32 %v1595_v30, %v1606_v36  ;;  %v321_v5 = vmul.f32 %v1595_v30, %v1644_v56  ;;  %1176 = vmatpush.msrb.mxu0 %v1149_v26  ;;  %1301 = vmatpush.msrb.mxu2 %v1149_v26 }
  0x86   :  { %v312_v32 = vadd.f32 %v308_v23, %v106_v29  ;;  %v35_v23 = vld [vmem:[%s2002_s0 + $0x10] sm:$0xff] }
  0x87   :  { %1230 = vmatmul.msk.f32.gmra.mxu0 %vm50_vm1, %v35_v23  ;;  %1248 = vmatmul.msk.f32.gmra.mxu2 %vm50_vm1, %v35_v23  ;;  %v1148_v29 = vld [vmem:[%s2004_s3 + $0x30] sm:$0xff] }
  0x88   :  { %v324_v37 = vadd.f32 %v320_v31, %v312_v32  ;;  %1257 = vmatmul.msk.f32.gmra.mxu3 %vm50_vm1, %v35_v23  ;;  %1239 = vmatmul.msk.f32.gmra.mxu1 %vm50_vm1, %v35_v23  ;;  %v30_v31 = vld [vmem:[%s2001_s2 + $0x38] sm:$0x1c] }
  0x89   :  { %1177 = vmatpush.msrb.mxu0 %v1148_v29  ;;  %1302 = vmatpush.msrb.mxu2 %v1148_v29  ;;  %v1718_v50 = vperm.slane %v30_v31, 3 }
  0x8a   :  { %v336_v41 = vadd.f32 %v332_v33, %v324_v37  ;;  %v1616_v42 = vpop.f32.mrf.mxu3  ;;  %v1147_v33 = vld [vmem:[%s2004_s3 + $0x28] sm:$0xff]  ;;  %v1146_v37 = vld [vmem:[%s2004_s3 + $0x20] sm:$0xff] }
  0x8b   :  { %v187_v44 = vpop.f32.mrf.mxu2  ;;  %v1620_v45 = vpop.f32.mrf.mxu1  ;;  %1178 = vmatpush.msrb.mxu0 %v1147_v33  ;;  %1303 = vmatpush.msrb.mxu2 %v1147_v33  ;;  %v323_v60 = vmul.f32 %v1595_v30, %v1718_v50 }
  0x8c   :  { %v1264_v48 = vmul.f32 -1.442695, %v336_v41  ;;  %v188_v49 = vadd.f32 %v187_v44, %v1609_v38  ;;  %v1704_v44 = vperm.slane %v30_v31, 2 }
  0x8d   :  { %1179 = vmatpush.msrb.mxu0 %v1146_v37  ;;  %1304 = vmatpush.msrb.mxu2 %v1146_v37 }
  0x8e   :  { %1330 = vpow2.f32 %v1264_v48  ;;  %v314_v53 = vadd.f32 %v310_v43, %v188_v49  ;;  %v36_v43 = vld [vmem:[%s2002_s0 + $0x18] sm:$0xff]  ;;  %v1144_v49 = vld [vmem:[%s2004_s3 + $0x10] sm:$0xff]  ;;  %v311_v51 = vmul.f32 %v1566_v17, %v1704_v44 }
  0x8f   :  { %1231 = vmatmul.msk.f32.gmra.mxu0 %vm50_vm1, %v36_v43  ;;  %1249 = vmatmul.msk.f32.gmra.mxu2 %vm50_vm1, %v36_v43 }
  0x90   :  { %v326_v57 = vadd.f32 %v322_v47, %v314_v53  ;;  %1180 = vmatpush.msrb.mxu0 %v1145_v46  ;;  %1258 = vmatmul.msk.f32.gmra.mxu3 %vm50_vm1, %v36_v43 }
  0x91   :  { %1240 = vmatmul.msk.f32.gmra.mxu1 %vm50_vm1, %v36_v43  ;;  %1305 = vmatpush.msrb.mxu2 %v1145_v46 }
  0x92   :  { %v338_v62 = vadd.f32 %v334_v52, %v326_v57  ;;  %v1658_v63 = vpop.f32.mrf.mxu3  ;;  %v1143_v52 = vld [vmem:[%s2004_s3 + $0x8] sm:$0xff]  ;;  %1181 = vmatpush.msrb.mxu0 %v1144_v49  ;;  %v1142_v57 = vld [vmem:[%s2004_s3] sm:$0xff] }
  0x93   :  { %v146_v0 = vpop.f32.mrf.mxu1  ;;  %1306 = vmatpush.msrb.mxu2 %v1144_v49 }
  0x94   :  { %v1331_v2 = vpop.eup %1330  ;;  %v1266_v6 = vmul.f32 -1.442695, %v338_v62  ;;  %v147_v9 = vadd.f32 %v146_v0, %v1647_v58  ;;  %1182 = vmatpush.msrb.mxu0 %v1143_v52  ;;  %v1735_v62 = vperm.slane %v30_v31, 4 }
  0x95   :  { %v1668_v11 = vadd.f32 1.0, %v1331_v2  ;;  %1307 = vmatpush.msrb.mxu2 %v1143_v52 }
  0x96   :  { %v313_v18 = vadd.f32 %v309_v10, %v147_v9  ;;  %1332 = vpow2.f32 %v1266_v6  ;;  %1183 = vmatpush.msrb.mxu0 %v1142_v57  ;;  %v335_v30 = vmul.f32 %v1587_v25, %v1735_v62 }
  0x97   :  { %1334 = vrcp.f32 %v1668_v11  ;;  %1250 = vmatmul.msk.f32.gmra.mxu2 %vm50_vm1, %v1516_v7  ;;  %vm349_vm2 = vweird.f32 %v1668_v11  ;;  %v353_v23 = vand.u32 2147483647, %v1668_v11 }
  0x98   :  { %v325_v28 = vadd.f32 %v321_v5, %v313_v18  ;;  %1259 = vmatmul.msk.f32.gmra.mxu3 %vm50_vm1, %v1516_v7  ;;  %1308 = vmatpush.msrb.mxu2 %v1142_v57  ;;  %v355_v18 = vand.u32 2147483648, %v1668_v11 }
  0x99   :  { %1241 = vmatmul.msk.f32.gmra.mxu1 %vm50_vm1, %v1516_v7  ;;  %vm354_vm7 = vcmp.eq.f32.partialorder %v353_v23, 8.507059e+37 }
  0x9a   :  { %v337_v32 = vadd.f32 %v333_v13, %v325_v28  ;;  %v228_v41 = vpop.f32.mrf.mxu3  ;;  %v356_v33 = vor.u32 1.1754944e-38, %v355_v18 }
  0x9b   :  { %v229_v48 = vadd.f32 %v228_v41, %v1696_v35  ;;  %v1263_v41 = vld [vmem:[%s2003_s1 + $0x8] sm:$0xff] }
  0x9c   :  { %v1265_v39 = vmul.f32 -1.442695, %v337_v32  ;;  %v1333_v19 = vpop.eup %1332 }
  0x9d   :  { %v1709_v47 = vpop.eup %1334  ;;  %v1728_v54 = vadd.f32 1.0, %v1333_v19  ;;  %v315_v55 = vadd.f32 %v311_v51, %v229_v48 }
  0x9e   :  { %1336 = vpow2.f32 %v1265_v39  ;;  %v345_v53 = vmul.f32 %v1709_v47, %v1668_v11  ;;  %vm350_vm3 = vweird.f32 %v1709_v47 }
  0x9f   :  { %1338 = vrcp.f32 %v1728_v54  ;;  %v327_v2 = vadd.f32 %v323_v60, %v315_v55  ;;  %1251 = vmatmul.msk.f32.gmra.mxu2 %vm50_vm1, %v1550_v15  ;;  %vm1757_vm4 = vmor %vm349_vm2, %vm350_vm3  ;;  %vm387_vm11 = vweird.f32 %v1728_v54  ;;  %v391_v55 = vand.u32 2147483647, %v1728_v54 }
  0xa0   :  { %v346_v1 = vsub.f32 1.0, %v345_v53  ;;  %1260 = vmatmul.msk.f32.gmra.mxu3 %vm50_vm1, %v1550_v15  ;;  %v393_v53 = vand.u32 2147483648, %v1728_v54 }
  0xa1   :  { %v339_v6 = vadd.f32 %v335_v30, %v327_v2  ;;  %1242 = vmatmul.msk.f32.gmra.mxu1 %vm50_vm1, %v1550_v15  ;;  %vm392_vm13 = vcmp.eq.f32.partialorder %v391_v55, 8.507059e+37  ;;  %v149_v30 = vpop.f32.mrf.mxu1 }
  0xa2   :  { %v347_v5 = vmul.f32 %v1709_v47, %v346_v1 }
  0xa4   :  { %v1337_v17 = vpop.eup %1336  ;;  %v348_v13 = vadd.f32 %v1709_v47, %v347_v5  ;;  %v190_v5 = vpop.f32.mrf.mxu2 }
  0xa5   :  { %v362_v0 = vadd.f32 1.0, %v1337_v17  ;;  %v1339_v9 = vpop.eup %1338  ;;  %v394_v17 = vor.u32 1.1754944e-38, %v393_v53  ;;  %v231_v53 = vpop.f32.mrf.mxu3 }
  0xa6   :  { %v383_v25 = vmul.f32 %v1339_v9, %v1728_v54  ;;  %v352_v31 = vsel %vm1757_vm4, %v1709_v47, %v348_v13  ;;  %vm388_vm10 = vweird.f32 %v1339_v9  ;;  %v108_v54 = vpop.f32.mrf.mxu0 }
  0xa7   :  { %1340 = vrcp.f32 %v362_v0  ;;  %v374_v26 = vand.u32 2147483648, %v362_v0  ;;  %v372_v32 = vand.u32 2147483647, %v362_v0  ;;  %vm368_vm6 = vweird.f32 %v362_v0  ;;  %1252 = vmatmul.msk.f32.gmra.mxu2 %vm50_vm1, %v1521_v8  ;;  %vm389_vm12 = vmor %vm387_vm11, %vm388_vm10 }
  0xa8   :  { %1342 = vtanh.f32 %v339_v6  ;;  %v384_v11 = vsub.f32 1.0, %v383_v25  ;;  %v357_v15 = vsel %vm354_vm7, %v356_v33, %v352_v31  ;;  %1261 = vmatmul.msk.f32.gmra.mxu3 %vm50_vm1, %v1521_v8  ;;  %v109_v6 = vadd.f32 %v108_v54, %v1579_v21 }
  0xa9   :  { %v375_v43 = vor.u32 1.1754944e-38, %v374_v26  ;;  %vm373_vm9 = vcmp.eq.f32.partialorder %v372_v32, 8.507059e+37  ;;  %1243 = vmatmul.msk.f32.gmra.mxu1 %vm50_vm1, %v1521_v8 }
  0xaa   :  { %v385_v48 = vmul.f32 %v1339_v9, %v384_v11 }
  0xac   :  { %v386_v52 = vadd.f32 %v1339_v9, %v385_v48  ;;  %v1808_v48 = vld [vmem:[%s2004_s3 + $0x80] ss:$0 sm:$0xff] }
  0xad   :  { %v1341_v10 = vpop.eup %1340 }
  0xae   :  { %v364_v12 = vmul.f32 %v1341_v10, %v362_v0  ;;  %vm369_vm5 = vweird.f32 %v1341_v10  ;;  %v1343_v39 = vpop.eup %1342  ;;  %v390_v57 = vsel %vm389_vm12, %v1339_v9, %v386_v52  ;;  %v191_v9 = vadd.f32 %v190_v5, %v1609_v38 }
  0xaf   :  { %vm370_vm8 = vmor %vm368_vm6, %vm369_vm5  ;;  %v399_v49 = vmul.f32 %v1343_v39, %v357_v15  ;;  %1253 = vmatmul.msk.f32.gmra.mxu2 %vm50_vm1, %v1555_v16  ;;  %v395_v60 = vsel %vm392_vm13, %v394_v17, %v390_v57  ;;  %v232_v17 = vadd.f32 %v231_v53, %v1696_v35 }
  0xb0   :  { %v365_v7 = vsub.f32 1.0, %v364_v12  ;;  %1262 = vmatmul.msk.f32.gmra.mxu3 %vm50_vm1, %v1555_v16 }
  0xb1   :  { %1244 = vmatmul.msk.f32.gmra.mxu1 %vm50_vm1, %v1555_v16  ;;  %v150_v16 = vadd.f32 %v149_v30, %v1647_v58 }
  0xb2   :  { %v366_v29 = vmul.f32 %v1341_v10, %v365_v7 }
  0xb4   :  { %v367_v37 = vadd.f32 %v1341_v10, %v366_v29 }
  0xb6   :  { %v371_v46 = vsel %vm370_vm8, %v1341_v10, %v367_v37 }
  0xb7   :  { %v376_v19 = vsel %vm373_vm9, %v375_v43, %v371_v46 }
  0xb8   :  { %v398_v47 = vmul.f32 %v1263_v41, %v376_v19 }
  0xba   :  { %v1775_v51 = vadd.f32 %v399_v49, %v398_v47 }
  0xbc   :  { %1344 = vtanh.f32 %v1775_v51 }
  0xc2   :  { %v1345_v8 = vpop.eup %1344 }
  0xc3   :  { %v402_v0 = vmul.f32 %v1345_v8, %v395_v60 }
  0xc5   :  { %422 = vperm.xlu2 %1316, %v402_v0   ;;  %410 = vperm.xlu1 %1315, %v402_v0  }
  0xc6   :  { %1184 = vmatmul.f32.vlgmr.msrb.gmra.mxu0 %v402_v0 }
  0xcd   :  { %1317 = vset.pattern.permute.xlu2 %v1461_v14 }
  0xce   :  { %434 = vperm.xlu2 %1317, %v402_v0  }
  0xd6   :  { %1318 = vset.pattern.permute.xlu2 %v1460_v4 }
 0x104   :  { %v1789_v2 = vpop.f32.mrf.mxu0 }
 0x10c   :  { %v1799_v26 = vpop.f32.mrf.mxu0 }
 0x11f   :  { %v423_v1 = vpop.permute.xlu2 %422 }
 0x120   :  { %v425_v7 = vmul.f32 %v423_v1, %v1581_v22  ;;  %v426_v23 = vmul.f32 %v423_v1, %v1644_v56  ;;  %v427_v28 = vmul.f32 %v423_v1, %v1606_v36 }
 0x128   :  { %v435_v12 = vpop.permute.xlu2 %434 }
 0x129   :  { %v437_v33 = vmul.f32 %v435_v12, %v1585_v24  ;;  %v438_v11 = vmul.f32 %v435_v12, %v1656_v61  ;;  %v439_v37 = vmul.f32 %v435_v12, %v1614_v40 }
 0x137   :  { %v411_v10 = vpop.permute.xlu1 %410 }
 0x138   :  { %v413_v13 = vmul.f32 %v411_v10, %v1576_v20  ;;  %v414_v18 = vmul.f32 %v411_v10, %v1649_v59  ;;  %v415_v25 = vmul.f32 %v411_v10, %v1601_v34  ;;  %v416_v8 = vmul.f32 %v411_v10, %v1704_v44 }
 0x139   :  { %v440_v10 = vmul.f32 %v435_v12, %v1735_v62 }
 0x13a   :  { %v417_v29 = vadd.f32 %v413_v13, %v109_v6  ;;  %v418_v31 = vadd.f32 %v414_v18, %v150_v16  ;;  %v419_v32 = vadd.f32 %v415_v25, %v191_v9  ;;  %v420_v54 = vadd.f32 %v416_v8, %v232_v17 }
 0x13b   :  { %v428_v16 = vmul.f32 %v423_v1, %v1718_v50 }
 0x13c   :  { %v429_v39 = vadd.f32 %v425_v7, %v417_v29  ;;  %v430_v41 = vadd.f32 %v426_v23, %v418_v31  ;;  %v431_v43 = vadd.f32 %v427_v28, %v419_v32 }
 0x13d   :  { %v432_v13 = vadd.f32 %v428_v16, %v420_v54 }
 0x13e   :  { %v441_v15 = vadd.f32 %v437_v33, %v429_v39  ;;  %v442_v46 = vadd.f32 %v438_v11, %v430_v41  ;;  %v443_v19 = vadd.f32 %v439_v37, %v431_v43 }
 0x13f   :  { %v444_v25 = vadd.f32 %v440_v10, %v432_v13 }
 0x140   :  { %v1267_v47 = vmul.f32 -1.442695, %v441_v15  ;;  %v1268_v49 = vmul.f32 -1.442695, %v442_v46  ;;  %v1269_v52 = vmul.f32 -1.442695, %v443_v19 }
 0x142   :  { %1346 = vpow2.f32 %v1267_v47 }
 0x143   :  { %1348 = vpow2.f32 %v1268_v49  ;;  %v1185_v55 = vpop.f32.mrf.mxu0 }
 0x144   :  { %1350 = vpow2.f32 %v1269_v52  ;;  %v1186_v57 = vadd.f32 %v1808_v48, %v1185_v55 }
 0x146   :  { %1210 = vst.msk [vmem:[%s2005_s4] sm:$0xff] %vm1209_vm14, %v1186_v57 }
 0x148   :  { %v1347_v60 = vpop.eup %1346 }
 0x149   :  { %v1349_v0 = vpop.eup %1348  ;;  %v448_v30 = vadd.f32 1.0, %v1347_v60 }
 0x14a   :  { %v1351_v5 = vpop.eup %1350  ;;  %v467_v6 = vadd.f32 1.0, %v1349_v0 }
 0x14b   :  { %1352 = vrcp.f32 %v448_v30  ;;  %v486_v9 = vadd.f32 1.0, %v1351_v5  ;;  %v460_v11 = vand.u32 2147483648, %v448_v30  ;;  %v458_v1 = vand.u32 2147483647, %v448_v30 }
 0x14c   :  { %1354 = vrcp.f32 %v467_v6  ;;  %v479_v39 = vand.u32 2147483648, %v467_v6  ;;  %v477_v43 = vand.u32 2147483647, %v467_v6  ;;  %vm454_vm1 = vweird.f32 %v448_v30 }
 0x14d   :  { %1356 = vrcp.f32 %v486_v9  ;;  %v461_v46 = vor.u32 1.1754944e-38, %v460_v11  ;;  %vm473_vm3 = vweird.f32 %v467_v6  ;;  %vm459_vm4 = vcmp.eq.f32.partialorder %v458_v1, 8.507059e+37 }
 0x14e   :  { %1358 = vtanh.f32 %v444_v25  ;;  %v480_v49 = vor.u32 1.1754944e-38, %v479_v39  ;;  %vm478_vm6 = vcmp.eq.f32.partialorder %v477_v43, 8.507059e+37  ;;  %vm492_vm8 = vweird.f32 %v486_v9  ;;  %v193_v25 = vpop.f32.mrf.mxu2 }
 0x14f   :  { %v496_v5 = vand.u32 2147483647, %v486_v9 }
 0x151   :  { %v1353_v18 = vpop.eup %1352  ;;  %vm497_vm10 = vcmp.eq.f32.partialorder %v496_v5, 8.507059e+37 }
 0x152   :  { %v1355_v7 = vpop.eup %1354  ;;  %v450_v23 = vmul.f32 %v1353_v18, %v448_v30  ;;  %vm455_vm15 = vweird.f32 %v1353_v18  ;;  %v498_v30 = vand.u32 2147483648, %v486_v9 }
 0x153   :  { %v1357_v28 = vpop.eup %1356  ;;  %v469_v29 = vmul.f32 %v1355_v7, %v467_v6  ;;  %vm474_vm0 = vweird.f32 %v1355_v7  ;;  %vm456_vm2 = vmor %vm454_vm1, %vm455_vm15 }
 0x154   :  { %v451_v31 = vsub.f32 1.0, %v450_v23  ;;  %v488_v32 = vmul.f32 %v1357_v28, %v486_v9  ;;  %vm475_vm5 = vmor %vm473_vm3, %vm474_vm0  ;;  %v1359_v52 = vpop.eup %1358  ;;  %vm493_vm7 = vweird.f32 %v1357_v28  ;;  %v499_v16 = vor.u32 1.1754944e-38, %v498_v30 }
 0x155   :  { %v470_v33 = vsub.f32 1.0, %v469_v29  ;;  %vm494_vm9 = vmor %vm492_vm8, %vm493_vm7 }
 0x156   :  { %v452_v37 = vmul.f32 %v1353_v18, %v451_v31  ;;  %v489_v12 = vsub.f32 1.0, %v488_v32 }
 0x157   :  { %v471_v41 = vmul.f32 %v1355_v7, %v470_v33 }
 0x158   :  { %v453_v15 = vadd.f32 %v1353_v18, %v452_v37  ;;  %v490_v17 = vmul.f32 %v1357_v28, %v489_v12 }
 0x159   :  { %v472_v19 = vadd.f32 %v1355_v7, %v471_v41 }
 0x15a   :  { %v457_v47 = vsel %vm456_vm2, %v1353_v18, %v453_v15  ;;  %v491_v54 = vadd.f32 %v1357_v28, %v490_v17 }
 0x15b   :  { %v462_v53 = vsel %vm459_vm4, %v461_v46, %v457_v47  ;;  %v476_v55 = vsel %vm475_vm5, %v1355_v7, %v472_v19  ;;  %v112_v7 = vadd.f32 %v1789_v2, %v1579_v21 }
 0x15c   :  { %v481_v57 = vsel %vm478_vm6, %v480_v49, %v476_v55  ;;  %v504_v8 = vmul.f32 %v1359_v52, %v462_v53  ;;  %v495_v6 = vsel %vm494_vm9, %v1357_v28, %v491_v54  ;;  %v194_v28 = vadd.f32 %v193_v25, %v1609_v38 }
 0x15d   :  { %v503_v60 = vmul.f32 %v481_v57, %v1775_v51  ;;  %v500_v10 = vsel %vm497_vm10, %v499_v16, %v495_v6  ;;  %v152_v51 = vpop.f32.mrf.mxu1 }
 0x15e   :  { %v153_v9 = vadd.f32 %v152_v51, %v1647_v58 }
 0x15f   :  { %v1820_v0 = vadd.f32 %v504_v8, %v503_v60  ;;  %v234_v60 = vpop.f32.mrf.mxu3 }
 0x160   :  { %v235_v5 = vadd.f32 %v234_v60, %v1696_v35 }
 0x161   :  { %1360 = vtanh.f32 %v1820_v0 }
 0x167   :  { %v1361_v13 = vpop.eup %1360 }
 0x168   :  { %v507_v18 = vmul.f32 %v1361_v13, %v500_v10 }
 0x16a   :  { %539 = vperm.xlu0 %1319, %v507_v18   ;;  %527 = vperm.xlu2 %1318, %v507_v18  }
 0x16b   :  { %515 = vperm.xlu1 %1315, %v507_v18   ;;  %1187 = vmatmul.f32.gmra.mxu0 %v507_v18 }
 0x172   :  { %1322 = vset.pattern.permute.xlu0 %v1460_v4 }
 0x1c4   :  { %v528_v23 = vpop.permute.xlu2 %527 }
 0x1c5   :  { %v530_v37 = vmul.f32 %v528_v23, %v1581_v22  ;;  %v531_v1 = vmul.f32 %v528_v23, %v1644_v56  ;;  %v532_v39 = vmul.f32 %v528_v23, %v1606_v36 }
 0x1dc   :  { %v540_v31 = vpop.permute.xlu0 %539 }
 0x1dd   :  { %v516_v29 = vpop.permute.xlu1 %515  ;;  %v542_v15 = vmul.f32 %v540_v31, %v1585_v24  ;;  %v543_v12 = vmul.f32 %v540_v31, %v1656_v61  ;;  %v544_v46 = vmul.f32 %v540_v31, %v1614_v40 }
 0x1de   :  { %v518_v32 = vmul.f32 %v516_v29, %v1576_v20  ;;  %v519_v33 = vmul.f32 %v516_v29, %v1649_v59  ;;  %v520_v11 = vmul.f32 %v516_v29, %v1601_v34  ;;  %v521_v6 = vmul.f32 %v516_v29, %v1704_v44 }
 0x1df   :  { %v545_v29 = vmul.f32 %v540_v31, %v1735_v62 }
 0x1e0   :  { %v522_v2 = vadd.f32 %v518_v32, %v112_v7  ;;  %v523_v41 = vadd.f32 %v519_v33, %v153_v9  ;;  %v524_v43 = vadd.f32 %v520_v11, %v194_v28  ;;  %v525_v10 = vadd.f32 %v521_v6, %v235_v5 }
 0x1e1   :  { %v533_v7 = vmul.f32 %v528_v23, %v1718_v50 }
 0x1e2   :  { %v534_v19 = vadd.f32 %v530_v37, %v522_v2  ;;  %v535_v47 = vadd.f32 %v531_v1, %v523_v41  ;;  %v536_v49 = vadd.f32 %v532_v39, %v524_v43 }
 0x1e3   :  { %v537_v28 = vadd.f32 %v533_v7, %v525_v10 }
 0x1e4   :  { %v546_v52 = vadd.f32 %v542_v15, %v534_v19  ;;  %v547_v53 = vadd.f32 %v543_v12, %v535_v47  ;;  %v548_v55 = vadd.f32 %v544_v46, %v536_v49 }
 0x1e5   :  { %v549_v33 = vadd.f32 %v545_v29, %v537_v28 }
 0x1e6   :  { %v1270_v57 = vmul.f32 -1.442695, %v546_v52  ;;  %v1271_v17 = vmul.f32 -1.442695, %v547_v53  ;;  %v1272_v8 = vmul.f32 -1.442695, %v548_v55 }
 0x1e8   :  { %1362 = vpow2.f32 %v1270_v57  ;;  %v1188_v54 = vpop.f32.mrf.mxu0 }
 0x1e9   :  { %1364 = vpow2.f32 %v1271_v17  ;;  %v1189_v30 = vadd.f32 %v1808_v48, %v1188_v54 }
 0x1ea   :  { %1366 = vpow2.f32 %v1272_v8 }
 0x1eb   :  { %1211 = vst.msk [vmem:[%s2005_s4 + $0x8] sm:$0xff] %vm1209_vm14, %v1189_v30 }
 0x1ee   :  { %v1363_v16 = vpop.eup %1362 }
 0x1ef   :  { %v1365_v13 = vpop.eup %1364  ;;  %v553_v18 = vadd.f32 1.0, %v1363_v16 }
 0x1f0   :  { %v1367_v51 = vpop.eup %1366  ;;  %v572_v25 = vadd.f32 1.0, %v1365_v13 }
 0x1f1   :  { %1368 = vrcp.f32 %v553_v18  ;;  %v591_v9 = vadd.f32 1.0, %v1367_v51  ;;  %v565_v15 = vand.u32 2147483648, %v553_v18  ;;  %v563_v23 = vand.u32 2147483647, %v553_v18 }
 0x1f2   :  { %1370 = vrcp.f32 %v572_v25  ;;  %v584_v46 = vand.u32 2147483648, %v572_v25  ;;  %v582_v47 = vand.u32 2147483647, %v572_v25  ;;  %vm559_vm13 = vweird.f32 %v553_v18 }
 0x1f3   :  { %1372 = vrcp.f32 %v591_v9  ;;  %v566_v52 = vor.u32 1.1754944e-38, %v565_v15  ;;  %vm578_vm0 = vweird.f32 %v572_v25  ;;  %vm564_vm1 = vcmp.eq.f32.partialorder %v563_v23, 8.507059e+37 }
 0x1f4   :  { %1374 = vtanh.f32 %v549_v33  ;;  %v585_v57 = vor.u32 1.1754944e-38, %v584_v46  ;;  %vm583_vm3 = vcmp.eq.f32.partialorder %v582_v47, 8.507059e+37  ;;  %v603_v10 = vand.u32 2147483648, %v591_v9 }
 0x1f5   :  { %vm597_vm5 = vweird.f32 %v591_v9 }
 0x1f7   :  { %v1369_v32 = vpop.eup %1368 }
 0x1f8   :  { %v1371_v11 = vpop.eup %1370  ;;  %v555_v37 = vmul.f32 %v1369_v32, %v553_v18  ;;  %vm560_vm11 = vweird.f32 %v1369_v32  ;;  %v601_v18 = vand.u32 2147483647, %v591_v9 }
 0x1f9   :  { %v1373_v1 = vpop.eup %1372  ;;  %v574_v39 = vmul.f32 %v1371_v11, %v572_v25  ;;  %vm579_vm12 = vweird.f32 %v1371_v11  ;;  %vm561_vm15 = vmor %vm559_vm13, %vm560_vm11  ;;  %v604_v25 = vor.u32 1.1754944e-38, %v603_v10 }
 0x1fa   :  { %v556_v2 = vsub.f32 1.0, %v555_v37  ;;  %v593_v41 = vmul.f32 %v1373_v1, %v591_v9  ;;  %vm580_vm2 = vmor %vm578_vm0, %vm579_vm12  ;;  %v1375_v17 = vpop.eup %1374  ;;  %vm598_vm4 = vweird.f32 %v1373_v1  ;;  %vm602_vm7 = vcmp.eq.f32.partialorder %v601_v18, 8.507059e+37 }
 0x1fb   :  { %v575_v43 = vsub.f32 1.0, %v574_v39  ;;  %vm599_vm6 = vmor %vm597_vm5, %vm598_vm4  ;;  %v115_v9 = vadd.f32 %v1799_v26, %v1579_v21 }
 0x1fc   :  { %v557_v12 = vmul.f32 %v1369_v32, %v556_v2  ;;  %v594_v31 = vsub.f32 1.0, %v593_v41 }
 0x1fd   :  { %v576_v19 = vmul.f32 %v1371_v11, %v575_v43 }
 0x1fe   :  { %v558_v49 = vadd.f32 %v1369_v32, %v557_v12  ;;  %v595_v30 = vmul.f32 %v1373_v1, %v594_v31 }
 0x1ff   :  { %v577_v53 = vadd.f32 %v1371_v11, %v576_v19 }
 0x200   :  { %v562_v55 = vsel %vm561_vm15, %v1369_v32, %v558_v49  ;;  %v596_v13 = vadd.f32 %v1373_v1, %v595_v30  ;;  %v196_v32 = vpop.f32.mrf.mxu2 }
 0x201   :  { %v567_v8 = vsel %vm564_vm1, %v566_v52, %v562_v55  ;;  %v581_v60 = vsel %vm580_vm2, %v1371_v11, %v577_v53  ;;  %v197_v39 = vadd.f32 %v196_v32, %v1609_v38 }
 0x202   :  { %v586_v54 = vsel %vm583_vm3, %v585_v57, %v581_v60  ;;  %v609_v5 = vmul.f32 %v1375_v17, %v567_v8  ;;  %v600_v51 = vsel %vm599_vm6, %v1373_v1, %v596_v13  ;;  %v237_v13 = vpop.f32.mrf.mxu3 }
 0x203   :  { %v608_v6 = vmul.f32 %v586_v54, %v1820_v0  ;;  %v605_v28 = vsel %vm602_vm7, %v604_v25, %v600_v51  ;;  %v155_v0 = vpop.f32.mrf.mxu1  ;;  %v238_v10 = vadd.f32 %v237_v13, %v1696_v35 }
 0x204   :  { %v156_v11 = vadd.f32 %v155_v0, %v1647_v58 }
 0x205   :  { %v1847_v16 = vadd.f32 %v609_v5, %v608_v6 }
 0x207   :  { %1376 = vtanh.f32 %v1847_v16 }
 0x20d   :  { %v1377_v7 = vpop.eup %1376 }
 0x20e   :  { %v612_v29 = vmul.f32 %v1377_v7, %v605_v28 }
 0x210   :  { %632 = vperm.xlu2 %1318, %v612_v29   ;;  %620 = vperm.xlu1 %1315, %v612_v29  }
 0x211   :  { %1190 = vmatmul.f32.gmra.mxu0 %v612_v29 }
 0x218   :  { %1320 = vset.pattern.permute.xlu1 %v1461_v14  ;;  %1321 = vset.pattern.permute.xlu2 %v1459_v3 }
 0x219   :  { %644 = vperm.xlu1 %1320, %v612_v29  }
 0x26a   :  { %v633_v41 = vpop.permute.xlu2 %632 }
 0x26b   :  { %v635_v23 = vmul.f32 %v633_v41, %v1581_v22  ;;  %v636_v46 = vmul.f32 %v633_v41, %v1644_v56  ;;  %v637_v26 = vmul.f32 %v633_v41, %v1606_v36 }
 0x282   :  { %v621_v33 = vpop.permute.xlu1 %620 }
 0x283   :  { %v623_v37 = vmul.f32 %v621_v33, %v1576_v20  ;;  %v624_v1 = vmul.f32 %v621_v33, %v1649_v59  ;;  %v625_v2 = vmul.f32 %v621_v33, %v1601_v34  ;;  %v626_v18 = vmul.f32 %v621_v33, %v1704_v44 }
 0x285   :  { %v627_v43 = vadd.f32 %v623_v37, %v115_v9  ;;  %v628_v15 = vadd.f32 %v624_v1, %v156_v11  ;;  %v629_v12 = vadd.f32 %v625_v2, %v197_v39  ;;  %v630_v0 = vadd.f32 %v626_v18, %v238_v10 }
 0x286   :  { %v638_v9 = vmul.f32 %v633_v41, %v1718_v50 }
 0x287   :  { %v639_v19 = vadd.f32 %v635_v23, %v627_v43  ;;  %v640_v47 = vadd.f32 %v636_v46, %v628_v15  ;;  %v641_v31 = vadd.f32 %v637_v26, %v629_v12 }
 0x288   :  { %v642_v37 = vadd.f32 %v638_v9, %v630_v0 }
 0x28b   :  { %v645_v49 = vpop.permute.xlu1 %644 }
 0x28c   :  { %v647_v52 = vmul.f32 %v645_v49, %v1585_v24  ;;  %v648_v53 = vmul.f32 %v645_v49, %v1656_v61  ;;  %v649_v55 = vmul.f32 %v645_v49, %v1614_v40  ;;  %v650_v11 = vmul.f32 %v645_v49, %v1735_v62 }
 0x28e   :  { %v651_v57 = vadd.f32 %v647_v52, %v639_v19  ;;  %v652_v17 = vadd.f32 %v648_v53, %v640_v47  ;;  %v653_v8 = vadd.f32 %v649_v55, %v641_v31  ;;  %v1191_v60 = vpop.f32.mrf.mxu0  ;;  %v654_v39 = vadd.f32 %v650_v11, %v642_v37 }
 0x28f   :  { %v1192_v54 = vadd.f32 %v1808_v48, %v1191_v60 }
 0x290   :  { %v1273_v30 = vmul.f32 -1.442695, %v651_v57  ;;  %v1274_v5 = vmul.f32 -1.442695, %v652_v17  ;;  %v1275_v6 = vmul.f32 -1.442695, %v653_v8 }
 0x291   :  { %1212 = vst.msk [vmem:[%s2005_s4 + $0x10] sm:$0xff] %vm1209_vm14, %v1192_v54 }
 0x292   :  { %1378 = vpow2.f32 %v1273_v30 }
 0x293   :  { %1380 = vpow2.f32 %v1274_v5 }
 0x294   :  { %1382 = vpow2.f32 %v1275_v6 }
 0x298   :  { %v1379_v51 = vpop.eup %1378 }
 0x299   :  { %v1381_v25 = vpop.eup %1380  ;;  %v658_v7 = vadd.f32 1.0, %v1379_v51 }
 0x29a   :  { %v1383_v28 = vpop.eup %1382  ;;  %v677_v29 = vadd.f32 1.0, %v1381_v25 }
 0x29b   :  { %1384 = vrcp.f32 %v658_v7  ;;  %v696_v32 = vadd.f32 1.0, %v1383_v28  ;;  %v670_v23 = vand.u32 2147483648, %v658_v7  ;;  %v668_v47 = vand.u32 2147483647, %v658_v7 }
 0x29c   :  { %1386 = vrcp.f32 %v677_v29  ;;  %v689_v31 = vand.u32 2147483648, %v677_v29  ;;  %v687_v49 = vand.u32 2147483647, %v677_v29  ;;  %vm664_vm10 = vweird.f32 %v658_v7 }
 0x29d   :  { %1388 = vrcp.f32 %v696_v32  ;;  %v671_v55 = vor.u32 1.1754944e-38, %v670_v23  ;;  %vm683_vm12 = vweird.f32 %v677_v29  ;;  %vm669_vm13 = vcmp.eq.f32.partialorder %v668_v47, 8.507059e+37 }
 0x29e   :  { %1390 = vtanh.f32 %v654_v39  ;;  %v690_v8 = vor.u32 1.1754944e-38, %v689_v31  ;;  %vm688_vm0 = vcmp.eq.f32.partialorder %v687_v49, 8.507059e+37  ;;  %v708_v25 = vand.u32 2147483648, %v696_v32 }
 0x29f   :  { %vm702_vm2 = vweird.f32 %v696_v32 }
 0x2a1   :  { %v1385_v1 = vpop.eup %1384 }
 0x2a2   :  { %v1387_v2 = vpop.eup %1386  ;;  %v660_v43 = vmul.f32 %v1385_v1, %v658_v7  ;;  %vm665_vm8 = vweird.f32 %v1385_v1  ;;  %v706_v7 = vand.u32 2147483647, %v696_v32 }
 0x2a3   :  { %v679_v33 = vmul.f32 %v1387_v2, %v677_v29  ;;  %v1389_v15 = vpop.eup %1388  ;;  %vm684_vm9 = vweird.f32 %v1387_v2  ;;  %vm666_vm11 = vmor %vm664_vm10, %vm665_vm8  ;;  %v709_v29 = vor.u32 1.1754944e-38, %v708_v25 }
 0x2a4   :  { %v661_v12 = vsub.f32 1.0, %v660_v43  ;;  %v698_v26 = vmul.f32 %v1389_v15, %v696_v32  ;;  %vm685_vm15 = vmor %vm683_vm12, %vm684_vm9  ;;  %v1391_v60 = vpop.eup %1390  ;;  %vm703_vm1 = vweird.f32 %v1389_v15  ;;  %vm707_vm4 = vcmp.eq.f32.partialorder %v706_v7, 8.507059e+37 }
 0x2a5   :  { %v680_v46 = vsub.f32 1.0, %v679_v33  ;;  %vm704_vm3 = vmor %vm702_vm2, %vm703_vm1 }
 0x2a6   :  { %v662_v19 = vmul.f32 %v1385_v1, %v661_v12  ;;  %v699_v53 = vsub.f32 1.0, %v698_v26 }
 0x2a7   :  { %v681_v41 = vmul.f32 %v1387_v2, %v680_v46 }
 0x2a8   :  { %v663_v52 = vadd.f32 %v1385_v1, %v662_v19  ;;  %v700_v13 = vmul.f32 %v1389_v15, %v699_v53 }
 0x2a9   :  { %v682_v57 = vadd.f32 %v1387_v2, %v681_v41 }
 0x2aa   :  { %v667_v17 = vsel %vm666_vm11, %v1385_v1, %v663_v52  ;;  %v701_v51 = vadd.f32 %v1389_v15, %v700_v13  ;;  %v199_v1 = vpop.f32.mrf.mxu2 }
 0x2ab   :  { %v672_v54 = vsel %vm669_vm13, %v671_v55, %v667_v17  ;;  %v686_v30 = vsel %vm685_vm15, %v1387_v2, %v682_v57  ;;  %v200_v43 = vadd.f32 %v199_v1, %v1609_v38 }
 0x2ac   :  { %v714_v5 = vmul.f32 %v1391_v60, %v672_v54  ;;  %v691_v6 = vsel %vm688_vm0, %v690_v8, %v686_v30  ;;  %v705_v28 = vsel %vm704_vm3, %v1389_v15, %v701_v51  ;;  %v118_v15 = vadd.f32 %v1589_v27, %v1579_v21 }
 0x2ad   :  { %v713_v10 = vmul.f32 %v691_v6, %v1847_v16  ;;  %v710_v9 = vsel %vm707_vm4, %v709_v29, %v705_v28  ;;  %v158_v16 = vpop.f32.mrf.mxu1  ;;  %v240_v6 = vpop.f32.mrf.mxu3 }
 0x2ae   :  { %v159_v32 = vadd.f32 %v158_v16, %v1647_v58  ;;  %v241_v51 = vadd.f32 %v240_v6, %v1696_v35 }
 0x2af   :  { %v1875_v18 = vadd.f32 %v714_v5, %v713_v10 }
 0x2b1   :  { %1392 = vtanh.f32 %v1875_v18 }
 0x2b7   :  { %v1393_v0 = vpop.eup %1392 }
 0x2b8   :  { %v717_v11 = vmul.f32 %v1393_v0, %v710_v9 }
 0x2ba   :  { %749 = vperm.xlu1 %1320, %v717_v11   ;;  %737 = vperm.xlu0 %1322, %v717_v11  }
 0x2bb   :  { %725 = vperm.xlu2 %1321, %v717_v11   ;;  %1193 = vmatmul.f32.gmra.mxu0 %v717_v11 }
 0x2c2   :  { %1323 = vset.pattern.permute.xlu1 %v1460_v4  ;;  %1325 = vset.pattern.permute.xlu0 %v1459_v3 }
 0x315   :  { %v726_v37 = vpop.permute.xlu2 %725 }
 0x316   :  { %v728_v39 = vmul.f32 %v726_v37, %v1576_v20  ;;  %v729_v2 = vmul.f32 %v726_v37, %v1649_v59  ;;  %v730_v33 = vmul.f32 %v726_v37, %v1601_v34  ;;  %v731_v25 = vmul.f32 %v726_v37, %v1704_v44 }
 0x318   :  { %v732_v46 = vadd.f32 %v728_v39, %v118_v15  ;;  %v733_v26 = vadd.f32 %v729_v2, %v159_v32  ;;  %v734_v19 = vadd.f32 %v730_v33, %v200_v43  ;;  %v735_v16 = vadd.f32 %v731_v25, %v241_v51 }
 0x32c   :  { %v750_v12 = vpop.permute.xlu1 %749  ;;  %v738_v23 = vpop.permute.xlu0 %737 }
 0x32d   :  { %v740_v47 = vmul.f32 %v738_v23, %v1581_v22  ;;  %v741_v31 = vmul.f32 %v738_v23, %v1644_v56  ;;  %v742_v41 = vmul.f32 %v738_v23, %v1606_v36  ;;  %v752_v49 = vmul.f32 %v750_v12, %v1585_v24 }
 0x32e   :  { %v753_v52 = vmul.f32 %v750_v12, %v1656_v61  ;;  %v754_v53 = vmul.f32 %v750_v12, %v1614_v40  ;;  %v743_v29 = vmul.f32 %v738_v23, %v1718_v50  ;;  %v755_v37 = vmul.f32 %v750_v12, %v1735_v62 }
 0x32f   :  { %v744_v55 = vadd.f32 %v740_v47, %v732_v46  ;;  %v745_v57 = vadd.f32 %v741_v31, %v733_v26  ;;  %v746_v27 = vadd.f32 %v742_v41, %v734_v19 }
 0x330   :  { %v747_v32 = vadd.f32 %v743_v29, %v735_v16 }
 0x331   :  { %v756_v17 = vadd.f32 %v752_v49, %v744_v55  ;;  %v757_v8 = vadd.f32 %v753_v52, %v745_v57  ;;  %v758_v60 = vadd.f32 %v754_v53, %v746_v27 }
 0x332   :  { %v759_v2 = vadd.f32 %v755_v37, %v747_v32  ;;  %v161_v32 = vpop.f32.mrf.mxu1  ;;  %v202_v37 = vpop.f32.mrf.mxu2 }
 0x333   :  { %v1276_v54 = vmul.f32 -1.442695, %v756_v17  ;;  %v1277_v30 = vmul.f32 -1.442695, %v757_v8  ;;  %v1278_v5 = vmul.f32 -1.442695, %v758_v60 }
 0x335   :  { %1394 = vpow2.f32 %v1276_v54 }
 0x336   :  { %1396 = vpow2.f32 %v1277_v30 }
 0x337   :  { %1398 = vpow2.f32 %v1278_v5 }
 0x338   :  { %v1194_v13 = vpop.f32.mrf.mxu0 }
 0x339   :  { %v1195_v10 = vadd.f32 %v1808_v48, %v1194_v13 }
 0x33b   :  { %1213 = vst.msk [vmem:[%s2005_s4 + $0x18] sm:$0xff] %vm1209_vm14, %v1195_v10  ;;  %v1395_v7 = vpop.eup %1394 }
 0x33c   :  { %v1397_v28 = vpop.eup %1396  ;;  %v763_v0 = vadd.f32 1.0, %v1395_v7 }
 0x33d   :  { %v1399_v9 = vpop.eup %1398  ;;  %v782_v11 = vadd.f32 1.0, %v1397_v28 }
 0x33e   :  { %1400 = vrcp.f32 %v763_v0  ;;  %v801_v1 = vadd.f32 1.0, %v1399_v9  ;;  %v775_v19 = vand.u32 2147483648, %v763_v0  ;;  %v773_v41 = vand.u32 2147483647, %v763_v0 }
 0x33f   :  { %1402 = vrcp.f32 %v782_v11  ;;  %v794_v49 = vand.u32 2147483648, %v782_v11  ;;  %v792_v53 = vand.u32 2147483647, %v782_v11  ;;  %vm769_vm7 = vweird.f32 %v763_v0 }
 0x340   :  { %1404 = vrcp.f32 %v801_v1  ;;  %v776_v57 = vor.u32 1.1754944e-38, %v775_v19  ;;  %vm788_vm9 = vweird.f32 %v782_v11  ;;  %vm774_vm10 = vcmp.eq.f32.partialorder %v773_v41, 8.507059e+37 }
 0x341   :  { %1406 = vtanh.f32 %v759_v2  ;;  %v795_v8 = vor.u32 1.1754944e-38, %v794_v49  ;;  %vm793_vm12 = vcmp.eq.f32.partialorder %v792_v53, 8.507059e+37  ;;  %v813_v7 = vand.u32 2147483648, %v801_v1 }
 0x342   :  { %vm807_vm15 = vweird.f32 %v801_v1  ;;  %v811_v28 = vand.u32 2147483647, %v801_v1 }
 0x344   :  { %v1401_v39 = vpop.eup %1400  ;;  %vm812_vm1 = vcmp.eq.f32.partialorder %v811_v28, 8.507059e+37 }
 0x345   :  { %v1403_v43 = vpop.eup %1402  ;;  %v765_v33 = vmul.f32 %v1401_v39, %v763_v0  ;;  %vm770_vm5 = vweird.f32 %v1401_v39  ;;  %v814_v0 = vor.u32 1.1754944e-38, %v813_v7 }
 0x346   :  { %v784_v15 = vmul.f32 %v1403_v43, %v782_v11  ;;  %v1405_v46 = vpop.eup %1404  ;;  %vm789_vm6 = vweird.f32 %v1403_v43  ;;  %vm771_vm8 = vmor %vm769_vm7, %vm770_vm5 }
 0x347   :  { %v766_v26 = vsub.f32 1.0, %v765_v33  ;;  %v803_v47 = vmul.f32 %v1405_v46, %v801_v1  ;;  %vm790_vm11 = vmor %vm788_vm9, %vm789_vm6  ;;  %v1407_v60 = vpop.eup %1406  ;;  %vm808_vm13 = vweird.f32 %v1405_v46 }
 0x348   :  { %v785_v23 = vsub.f32 1.0, %v784_v15  ;;  %vm809_vm0 = vmor %vm807_vm15, %vm808_vm13  ;;  %v121_v15 = vadd.f32 %v1620_v45, %v1579_v21 }
 0x349   :  { %v767_v31 = vmul.f32 %v1401_v39, %v766_v26  ;;  %v804_v12 = vsub.f32 1.0, %v803_v47 }
 0x34a   :  { %v786_v52 = vmul.f32 %v1403_v43, %v785_v23 }
 0x34b   :  { %v768_v55 = vadd.f32 %v1401_v39, %v767_v31  ;;  %v805_v13 = vmul.f32 %v1405_v46, %v804_v12 }
 0x34c   :  { %v787_v27 = vadd.f32 %v1403_v43, %v786_v52 }
 0x34d   :  { %v772_v17 = vsel %vm771_vm8, %v1401_v39, %v768_v55  ;;  %v806_v25 = vadd.f32 %v1405_v46, %v805_v13  ;;  %v162_v39 = vadd.f32 %v161_v32, %v1647_v58 }
 0x34e   :  { %v777_v54 = vsel %vm774_vm10, %v776_v57, %v772_v17  ;;  %v791_v30 = vsel %vm790_vm11, %v1403_v43, %v787_v27  ;;  %v203_v43 = vadd.f32 %v202_v37, %v1609_v38 }
 0x34f   :  { %v819_v5 = vmul.f32 %v1407_v60, %v777_v54  ;;  %v796_v6 = vsel %vm793_vm12, %v795_v8, %v791_v30  ;;  %v810_v29 = vsel %vm809_vm0, %v1405_v46, %v806_v25 }
 0x350   :  { %v818_v10 = vmul.f32 %v796_v6, %v1875_v18  ;;  %v815_v11 = vsel %vm812_vm1, %v814_v0, %v810_v29 }
 0x352   :  { %v1903_v51 = vadd.f32 %v819_v5, %v818_v10  ;;  %v243_v5 = vpop.f32.mrf.mxu3 }
 0x353   :  { %v244_v10 = vadd.f32 %v243_v5, %v1696_v35 }
 0x354   :  { %1408 = vtanh.f32 %v1903_v51 }
 0x35a   :  { %v1409_v9 = vpop.eup %1408 }
 0x35b   :  { %v822_v16 = vmul.f32 %v1409_v9, %v815_v11 }
 0x35d   :  { %842 = vperm.xlu1 %1323, %v822_v16   ;;  %830 = vperm.xlu2 %1321, %v822_v16  }
 0x35e   :  { %1196 = vmatmul.f32.gmra.mxu0 %v822_v16 }
 0x365   :  { %1324 = vset.pattern.permute.xlu2 %v1461_v14 }
 0x366   :  { %854 = vperm.xlu2 %1324, %v822_v16  }
 0x3b7   :  { %v831_v18 = vpop.permute.xlu2 %830 }
 0x3b8   :  { %v833_v1 = vmul.f32 %v831_v18, %v1576_v20  ;;  %v834_v2 = vmul.f32 %v831_v18, %v1649_v59  ;;  %v835_v33 = vmul.f32 %v831_v18, %v1601_v34  ;;  %v836_v25 = vmul.f32 %v831_v18, %v1704_v44 }
 0x3ba   :  { %v837_v26 = vadd.f32 %v833_v1, %v121_v15  ;;  %v838_v19 = vadd.f32 %v834_v2, %v162_v39  ;;  %v839_v47 = vadd.f32 %v835_v33, %v203_v43  ;;  %v840_v16 = vadd.f32 %v836_v25, %v244_v10 }
 0x3c0   :  { %v855_v46 = vpop.permute.xlu2 %854 }
 0x3c1   :  { %v857_v52 = vmul.f32 %v855_v46, %v1585_v24  ;;  %v858_v53 = vmul.f32 %v855_v46, %v1656_v61  ;;  %v859_v55 = vmul.f32 %v855_v46, %v1614_v40  ;;  %v860_v18 = vmul.f32 %v855_v46, %v1735_v62 }
 0x3cf   :  { %v843_v23 = vpop.permute.xlu1 %842 }
 0x3d0   :  { %v845_v31 = vmul.f32 %v843_v23, %v1581_v22  ;;  %v846_v41 = vmul.f32 %v843_v23, %v1644_v56  ;;  %v847_v49 = vmul.f32 %v843_v23, %v1606_v36  ;;  %v848_v29 = vmul.f32 %v843_v23, %v1718_v50 }
 0x3d2   :  { %v849_v12 = vadd.f32 %v845_v31, %v837_v26  ;;  %v850_v57 = vadd.f32 %v846_v41, %v838_v19  ;;  %v851_v45 = vadd.f32 %v847_v49, %v839_v47  ;;  %v852_v32 = vadd.f32 %v848_v29, %v840_v16 }
 0x3d4   :  { %v861_v27 = vadd.f32 %v857_v52, %v849_v12  ;;  %v862_v17 = vadd.f32 %v858_v53, %v850_v57  ;;  %v863_v8 = vadd.f32 %v859_v55, %v851_v45  ;;  %v864_v39 = vadd.f32 %v860_v18, %v852_v32 }
 0x3d6   :  { %v1279_v60 = vmul.f32 -1.442695, %v861_v27  ;;  %v1280_v54 = vmul.f32 -1.442695, %v862_v17  ;;  %v1281_v30 = vmul.f32 -1.442695, %v863_v8 }
 0x3d8   :  { %1410 = vpow2.f32 %v1279_v60 }
 0x3d9   :  { %1412 = vpow2.f32 %v1280_v54 }
 0x3da   :  { %1414 = vpow2.f32 %v1281_v30 }
 0x3db   :  { %v1197_v6 = vpop.f32.mrf.mxu0 }
 0x3dc   :  { %v1198_v13 = vadd.f32 %v1808_v48, %v1197_v6 }
 0x3de   :  { %v1411_v7 = vpop.eup %1410  ;;  %1214 = vst.msk [vmem:[%s2005_s4 + $0x20] sm:$0xff] %vm1209_vm14, %v1198_v13 }
 0x3df   :  { %v1413_v28 = vpop.eup %1412  ;;  %v868_v0 = vadd.f32 1.0, %v1411_v7 }
 0x3e0   :  { %v1415_v9 = vpop.eup %1414  ;;  %v887_v11 = vadd.f32 1.0, %v1413_v28 }
 0x3e1   :  { %1416 = vrcp.f32 %v868_v0  ;;  %v906_v48 = vadd.f32 1.0, %v1415_v9  ;;  %v880_v26 = vand.u32 2147483648, %v868_v0  ;;  %v878_v31 = vand.u32 2147483647, %v868_v0 }
 0x3e2   :  { %1418 = vrcp.f32 %v887_v11  ;;  %v899_v41 = vand.u32 2147483648, %v887_v11  ;;  %v897_v52 = vand.u32 2147483647, %v887_v11  ;;  %vm874_vm4 = vweird.f32 %v868_v0 }
 0x3e3   :  { %1420 = vrcp.f32 %v906_v48  ;;  %v881_v55 = vor.u32 1.1754944e-38, %v880_v26  ;;  %vm893_vm6 = vweird.f32 %v887_v11  ;;  %vm879_vm7 = vcmp.eq.f32.partialorder %v878_v31, 8.507059e+37 }
 0x3e4   :  { %1422 = vtanh.f32 %v864_v39  ;;  %v900_v45 = vor.u32 1.1754944e-38, %v899_v41  ;;  %vm898_vm9 = vcmp.eq.f32.partialorder %v897_v52, 8.507059e+37  ;;  %v918_v10 = vand.u32 2147483648, %v906_v48 }
 0x3e5   :  { %vm912_vm11 = vweird.f32 %v906_v48  ;;  %v916_v25 = vand.u32 2147483647, %v906_v48 }
 0x3e6   :  { %v919_v28 = vor.u32 1.1754944e-38, %v918_v10 }
 0x3e7   :  { %v1417_v37 = vpop.eup %1416  ;;  %vm917_vm13 = vcmp.eq.f32.partialorder %v916_v25, 8.507059e+37 }
 0x3e8   :  { %v1419_v1 = vpop.eup %1418  ;;  %v870_v2 = vmul.f32 %v1417_v37, %v868_v0  ;;  %vm875_vm2 = vweird.f32 %v1417_v37 }
 0x3e9   :  { %v889_v43 = vmul.f32 %v1419_v1, %v887_v11  ;;  %v1421_v33 = vpop.eup %1420  ;;  %vm894_vm3 = vweird.f32 %v1419_v1  ;;  %vm876_vm5 = vmor %vm874_vm4, %vm875_vm2  ;;  %v205_v11 = vpop.f32.mrf.mxu2 }
 0x3ea   :  { %v871_v15 = vsub.f32 1.0, %v870_v2  ;;  %v908_v23 = vmul.f32 %v1421_v33, %v906_v48  ;;  %vm895_vm8 = vmor %vm893_vm6, %vm894_vm3  ;;  %v1423_v27 = vpop.eup %1422  ;;  %vm913_vm10 = vweird.f32 %v1421_v33  ;;  %v206_v48 = vadd.f32 %v205_v11, %v1609_v38 }
 0x3eb   :  { %v890_v19 = vsub.f32 1.0, %v889_v43  ;;  %vm914_vm12 = vmor %vm912_vm11, %vm913_vm10 }
 0x3ec   :  { %v872_v47 = vmul.f32 %v1417_v37, %v871_v15  ;;  %v909_v46 = vsub.f32 1.0, %v908_v23 }
 0x3ed   :  { %v891_v49 = vmul.f32 %v1419_v1, %v890_v19 }
 0x3ee   :  { %v873_v53 = vadd.f32 %v1417_v37, %v872_v47  ;;  %v910_v30 = vmul.f32 %v1421_v33, %v909_v46 }
 0x3ef   :  { %v892_v12 = vadd.f32 %v1419_v1, %v891_v49 }
 0x3f0   :  { %v877_v57 = vsel %vm876_vm5, %v1417_v37, %v873_v53  ;;  %v911_v13 = vadd.f32 %v1421_v33, %v910_v30  ;;  %v124_v37 = vadd.f32 %v1616_v42, %v1579_v21 }
 0x3f1   :  { %v882_v17 = vsel %vm879_vm7, %v881_v55, %v877_v57  ;;  %v896_v8 = vsel %vm895_vm8, %v1419_v1, %v892_v12  ;;  %v246_v57 = vpop.f32.mrf.mxu3 }
 0x3f2   :  { %v924_v60 = vmul.f32 %v1423_v27, %v882_v17  ;;  %v901_v54 = vsel %vm898_vm9, %v900_v45, %v896_v8  ;;  %v915_v7 = vsel %vm914_vm12, %v1421_v33, %v911_v13  ;;  %v1952_v27 = vld [vmem:[%s2004_s3 + $0x80] ss:$0 sm:$0xff]  ;;  %v247_v8 = vadd.f32 %v246_v57, %v1696_v35 }
 0x3f3   :  { %v923_v5 = vmul.f32 %v901_v54, %v1903_v51  ;;  %v920_v0 = vsel %vm917_vm13, %v919_v28, %v915_v7  ;;  %v164_v51 = vpop.f32.mrf.mxu1 }
 0x3f4   :  { %v165_v16 = vadd.f32 %v164_v51, %v1647_v58 }
 0x3f5   :  { %v1930_v6 = vadd.f32 %v924_v60, %v923_v5 }
 0x3f7   :  { %1424 = vtanh.f32 %v1930_v6 }
 0x3fd   :  { %v1425_v29 = vpop.eup %1424 }
 0x3fe   :  { %v927_v9 = vmul.f32 %v1425_v29, %v920_v0 }
 0x400   :  { %959 = vperm.xlu2 %1324, %v927_v9   ;;  %947 = vperm.xlu1 %1323, %v927_v9  }
 0x401   :  { %935 = vperm.xlu0 %1325, %v927_v9   ;;  %1199 = vmatmul.f32.gmra.mxu0 %v927_v9 }
 0x408   :  { %1327 = vset.pattern.permute.xlu2 %v1460_v4  ;;  %1326 = vset.pattern.permute.xlu1 %v1459_v3 }
 0x409   :  { %1328 = vset.pattern.permute.xlu0 %v1461_v14 }
 0x45a   :  { %v960_v39 = vpop.permute.xlu2 %959 }
 0x45b   :  { %v962_v19 = vmul.f32 %v960_v39, %v1585_v24  ;;  %v963_v42 = vmul.f32 %v960_v39, %v1656_v61  ;;  %v964_v23 = vmul.f32 %v960_v39, %v1614_v40  ;;  %v965_v0 = vmul.f32 %v960_v39, %v1735_v62 }
 0x472   :  { %v948_v32 = vpop.permute.xlu1 %947 }
 0x473   :  { %v936_v18 = vpop.permute.xlu0 %935  ;;  %v950_v14 = vmul.f32 %v948_v32, %v1581_v22  ;;  %v951_v2 = vmul.f32 %v948_v32, %v1644_v56  ;;  %v952_v43 = vmul.f32 %v948_v32, %v1606_v36  ;;  %v953_v7 = vmul.f32 %v948_v32, %v1718_v50 }
 0x474   :  { %v938_v1 = vmul.f32 %v936_v18, %v1576_v20  ;;  %v939_v4 = vmul.f32 %v936_v18, %v1649_v59  ;;  %v940_v3 = vmul.f32 %v936_v18, %v1601_v34  ;;  %v941_v60 = vmul.f32 %v936_v18, %v1704_v44 }
 0x476   :  { %v942_v33 = vadd.f32 %v938_v1, %v124_v37  ;;  %v943_v15 = vadd.f32 %v939_v4, %v165_v16  ;;  %v944_v26 = vadd.f32 %v940_v3, %v206_v48  ;;  %v945_v5 = vadd.f32 %v941_v60, %v247_v8 }
 0x478   :  { %v954_v47 = vadd.f32 %v950_v14, %v942_v33  ;;  %v955_v31 = vadd.f32 %v951_v2, %v943_v15  ;;  %v956_v41 = vadd.f32 %v952_v43, %v944_v26  ;;  %v957_v29 = vadd.f32 %v953_v7, %v945_v5  ;;  %v208_v5 = vpop.f32.mrf.mxu2 }
 0x47a   :  { %v966_v49 = vadd.f32 %v962_v19, %v954_v47  ;;  %v967_v52 = vadd.f32 %v963_v42, %v955_v31  ;;  %v968_v53 = vadd.f32 %v964_v23, %v956_v41  ;;  %v969_v51 = vadd.f32 %v965_v0, %v957_v29 }
 0x47c   :  { %v1282_v46 = vmul.f32 -1.442695, %v966_v49  ;;  %v1283_v55 = vmul.f32 -1.442695, %v967_v52  ;;  %v1284_v12 = vmul.f32 -1.442695, %v968_v53 }
 0x47e   :  { %1426 = vpow2.f32 %v1282_v46  ;;  %v1200_v45 = vpop.f32.mrf.mxu0 }
 0x47f   :  { %1428 = vpow2.f32 %v1283_v55  ;;  %v1201_v17 = vadd.f32 %v1952_v27, %v1200_v45 }
 0x480   :  { %1430 = vpow2.f32 %v1284_v12 }
 0x481   :  { %1215 = vst.msk [vmem:[%s2005_s4 + $0x28] sm:$0xff] %vm1209_vm14, %v1201_v17 }
 0x484   :  { %v1427_v54 = vpop.eup %1426 }
 0x485   :  { %v1429_v30 = vpop.eup %1428  ;;  %v973_v13 = vadd.f32 1.0, %v1427_v54 }
 0x486   :  { %v1431_v10 = vpop.eup %1430  ;;  %v992_v25 = vadd.f32 1.0, %v1429_v30 }
 0x487   :  { %1432 = vrcp.f32 %v973_v13  ;;  %v1011_v28 = vadd.f32 1.0, %v1431_v10  ;;  %v985_v3 = vand.u32 2147483648, %v973_v13  ;;  %v983_v32 = vand.u32 2147483647, %v973_v13 }
 0x488   :  { %1434 = vrcp.f32 %v992_v25  ;;  %v1004_v2 = vand.u32 2147483648, %v992_v25  ;;  %v1002_v33 = vand.u32 2147483647, %v992_v25  ;;  %vm979_vm1 = vweird.f32 %v973_v13 }
 0x489   :  { %1436 = vrcp.f32 %v1011_v28  ;;  %v986_v26 = vor.u32 1.1754944e-38, %v985_v3  ;;  %vm998_vm3 = vweird.f32 %v992_v25  ;;  %vm984_vm4 = vcmp.eq.f32.partialorder %v983_v32, 8.507059e+37  ;;  %v249_v32 = vpop.f32.mrf.mxu3 }
 0x48a   :  { %1438 = vtanh.f32 %v969_v51  ;;  %v1005_v23 = vor.u32 1.1754944e-38, %v1004_v2  ;;  %vm1003_vm6 = vcmp.eq.f32.partialorder %v1002_v33, 8.507059e+37  ;;  %v1023_v57 = vand.u32 2147483648, %v1011_v28 }
 0x48b   :  { %vm1017_vm8 = vweird.f32 %v1011_v28  ;;  %v1021_v45 = vand.u32 2147483647, %v1011_v28 }
 0x48c   :  { %v1024_v8 = vor.u32 1.1754944e-38, %v1023_v57 }
 0x48d   :  { %v1433_v9 = vpop.eup %1432  ;;  %vm1022_vm10 = vcmp.eq.f32.partialorder %v1021_v45, 8.507059e+37 }
 0x48e   :  { %v1435_v11 = vpop.eup %1434  ;;  %v975_v16 = vmul.f32 %v1433_v9, %v973_v13  ;;  %vm980_vm15 = vweird.f32 %v1433_v9 }
 0x48f   :  { %v1437_v48 = vpop.eup %1436  ;;  %v994_v18 = vmul.f32 %v1435_v11, %v992_v25  ;;  %vm999_vm0 = vweird.f32 %v1435_v11  ;;  %vm981_vm2 = vmor %vm979_vm1, %vm980_vm15  ;;  %v209_v25 = vadd.f32 %v208_v5, %v1609_v38 }
 0x490   :  { %v976_v37 = vsub.f32 1.0, %v975_v16  ;;  %v1013_v1 = vmul.f32 %v1437_v48, %v1011_v28  ;;  %vm1000_vm5 = vmor %vm998_vm3, %vm999_vm0  ;;  %v1439_v47 = vpop.eup %1438  ;;  %vm1018_vm7 = vweird.f32 %v1437_v48  ;;  %v127_v28 = vadd.f32 %v1658_v63, %v1579_v21 }
 0x491   :  { %v995_v4 = vsub.f32 1.0, %v994_v18  ;;  %vm1019_vm9 = vmor %vm1017_vm8, %vm1018_vm7 }
 0x492   :  { %v977_v14 = vmul.f32 %v1433_v9, %v976_v37  ;;  %v1014_v39 = vsub.f32 1.0, %v1013_v1 }
 0x493   :  { %v996_v43 = vmul.f32 %v1435_v11, %v995_v4 }
 0x494   :  { %v978_v15 = vadd.f32 %v1433_v9, %v977_v14  ;;  %v1015_v52 = vmul.f32 %v1437_v48, %v1014_v39 }
 0x495   :  { %v997_v19 = vadd.f32 %v1435_v11, %v996_v43 }
 0x496   :  { %v982_v42 = vsel %vm981_vm2, %v1433_v9, %v978_v15  ;;  %v1016_v12 = vadd.f32 %v1437_v48, %v1015_v52 }
 0x497   :  { %v987_v31 = vsel %vm984_vm4, %v986_v26, %v982_v42  ;;  %v1001_v41 = vsel %vm1000_vm5, %v1435_v11, %v997_v19 }
 0x498   :  { %v1006_v49 = vsel %vm1003_vm6, %v1005_v23, %v1001_v41  ;;  %v1029_v53 = vmul.f32 %v1439_v47, %v987_v31  ;;  %v1020_v17 = vsel %vm1019_vm9, %v1437_v48, %v1016_v12 }
 0x499   :  { %v1028_v46 = vmul.f32 %v1006_v49, %v1930_v6  ;;  %v1025_v54 = vsel %vm1022_vm10, %v1024_v8, %v1020_v17  ;;  %v167_v6 = vpop.f32.mrf.mxu1 }
 0x49a   :  { %v168_v10 = vadd.f32 %v167_v6, %v1647_v58 }
 0x49b   :  { %v1964_v55 = vadd.f32 %v1029_v53, %v1028_v46 }
 0x49d   :  { %1440 = vtanh.f32 %v1964_v55 }
 0x4a3   :  { %v1441_v60 = vpop.eup %1440 }
 0x4a4   :  { %v1032_v30 = vmul.f32 %v1441_v60, %v1025_v54 }
 0x4a6   :  { %1064 = vperm.xlu0 %1328, %v1032_v30   ;;  %1052 = vperm.xlu2 %1327, %v1032_v30  }
 0x4a7   :  { %1040 = vperm.xlu1 %1326, %v1032_v30   ;;  %1202 = vmatmul.f32.vlgmr.msrb.gmra.mxu2 %v1032_v30 }
 0x500   :  { %v1053_v13 = vpop.permute.xlu2 %1052 }
 0x501   :  { %v1055_v11 = vmul.f32 %v1053_v13, %v1581_v22  ;;  %v1056_v16 = vmul.f32 %v1053_v13, %v1644_v56  ;;  %v1057_v48 = vmul.f32 %v1053_v13, %v1606_v36  ;;  %v250_v36 = vadd.f32 %v249_v32, %v1696_v35 }
 0x502   :  { %v1058_v19 = vmul.f32 %v1053_v13, %v1718_v50 }
 0x518   :  { %v1065_v29 = vpop.permute.xlu0 %1064 }
 0x519   :  { %v1041_v7 = vpop.permute.xlu1 %1040  ;;  %v1067_v37 = vmul.f32 %v1065_v29, %v1585_v24  ;;  %v1068_v21 = vmul.f32 %v1065_v29, %v1656_v61  ;;  %v1069_v63 = vmul.f32 %v1065_v29, %v1614_v40 }
 0x51a   :  { %v1043_v0 = vmul.f32 %v1041_v7, %v1576_v20  ;;  %v1044_v9 = vmul.f32 %v1041_v7, %v1649_v59  ;;  %v1045_v51 = vmul.f32 %v1041_v7, %v1601_v34  ;;  %v1046_v24 = vmul.f32 %v1041_v7, %v1704_v44 }
 0x51b   :  { %v1070_v44 = vmul.f32 %v1065_v29, %v1735_v62 }
 0x51c   :  { %v1047_v58 = vadd.f32 %v1043_v0, %v127_v28  ;;  %v1048_v18 = vadd.f32 %v1044_v9, %v168_v10  ;;  %v1049_v38 = vadd.f32 %v1045_v51, %v209_v25  ;;  %v1050_v43 = vadd.f32 %v1046_v24, %v250_v36 }
 0x51e   :  { %v1059_v20 = vadd.f32 %v1055_v11, %v1047_v58  ;;  %v1060_v1 = vadd.f32 %v1056_v16, %v1048_v18  ;;  %v1061_v59 = vadd.f32 %v1057_v48, %v1049_v38  ;;  %v1062_v35 = vadd.f32 %v1058_v19, %v1050_v43 }
 0x520   :  { %v1071_v4 = vadd.f32 %v1067_v37, %v1059_v20  ;;  %v1072_v34 = vadd.f32 %v1068_v21, %v1060_v1  ;;  %v1073_v3 = vadd.f32 %v1069_v63, %v1061_v59  ;;  %v1074_v47 = vadd.f32 %v1070_v44, %v1062_v35 }
 0x522   :  { %v1285_v22 = vmul.f32 -1.442695, %v1071_v4  ;;  %v1286_v14 = vmul.f32 -1.442695, %v1072_v34  ;;  %v1287_v56 = vmul.f32 -1.442695, %v1073_v3 }
 0x524   :  { %1442 = vpow2.f32 %v1285_v22 }
 0x525   :  { %1444 = vpow2.f32 %v1286_v14 }
 0x526   :  { %1446 = vpow2.f32 %v1287_v56 }
 0x52a   :  { %v1443_v61 = vpop.eup %1442  ;;  %v1203_v2 = vpop.f32.mrf.mxu2 }
 0x52b   :  { %v1445_v40 = vpop.eup %1444  ;;  %v1078_v33 = vadd.f32 1.0, %v1443_v61  ;;  %v1204_v15 = vadd.f32 %v1952_v27, %v1203_v2 }
 0x52c   :  { %v1447_v39 = vpop.eup %1446  ;;  %v1097_v26 = vadd.f32 1.0, %v1445_v40 }
 0x52d   :  { %1448 = vrcp.f32 %v1078_v33  ;;  %v1116_v42 = vadd.f32 1.0, %v1447_v39  ;;  %1216 = vst.msk [vmem:[%s2005_s4 + $0x30] sm:$0xff] %vm1209_vm14, %v1204_v15  ;;  %v1090_v46 = vand.u32 2147483648, %v1078_v33  ;;  %v1088_v45 = vand.u32 2147483647, %v1078_v33 }
 0x52e   :  { %1450 = vrcp.f32 %v1097_v26  ;;  %v1109_v17 = vand.u32 2147483648, %v1097_v26  ;;  %v1107_v60 = vand.u32 2147483647, %v1097_v26  ;;  %vm1084_vm13 = vweird.f32 %v1078_v33 }
 0x52f   :  { %1452 = vrcp.f32 %v1116_v42  ;;  %v1091_v30 = vor.u32 1.1754944e-38, %v1090_v46  ;;  %vm1103_vm0 = vweird.f32 %v1097_v26  ;;  %vm1089_vm1 = vcmp.eq.f32.partialorder %v1088_v45, 8.507059e+37 }
 0x530   :  { %1454 = vtanh.f32 %v1074_v47  ;;  %v1110_v13 = vor.u32 1.1754944e-38, %v1109_v17  ;;  %vm1108_vm3 = vcmp.eq.f32.partialorder %v1107_v60, 8.507059e+37  ;;  %v1128_v16 = vand.u32 2147483648, %v1116_v42 }
 0x531   :  { %vm1122_vm5 = vweird.f32 %v1116_v42  ;;  %v1126_v48 = vand.u32 2147483647, %v1116_v42 }
 0x532   :  { %v1129_v18 = vor.u32 1.1754944e-38, %v1128_v16 }
 0x533   :  { %v1449_v23 = vpop.eup %1448  ;;  %vm1127_vm7 = vcmp.eq.f32.partialorder %v1126_v48, 8.507059e+37 }
 0x534   :  { %v1451_v31 = vpop.eup %1450  ;;  %v1080_v41 = vmul.f32 %v1449_v23, %v1078_v33  ;;  %vm1085_vm11 = vweird.f32 %v1449_v23 }
 0x535   :  { %v1453_v49 = vpop.eup %1452  ;;  %v1099_v52 = vmul.f32 %v1451_v31, %v1097_v26  ;;  %vm1104_vm12 = vweird.f32 %v1451_v31  ;;  %vm1086_vm15 = vmor %vm1084_vm13, %vm1085_vm11 }
 0x536   :  { %v1081_v53 = vsub.f32 1.0, %v1080_v41  ;;  %v1118_v50 = vmul.f32 %v1453_v49, %v1116_v42  ;;  %vm1105_vm2 = vmor %vm1103_vm0, %vm1104_vm12  ;;  %v1455_v10 = vpop.eup %1454  ;;  %vm1123_vm4 = vweird.f32 %v1453_v49 }
 0x537   :  { %v1100_v12 = vsub.f32 1.0, %v1099_v52  ;;  %vm1124_vm6 = vmor %vm1122_vm5, %vm1123_vm4 }
 0x538   :  { %v1082_v57 = vmul.f32 %v1449_v23, %v1081_v53  ;;  %v1119_v62 = vsub.f32 1.0, %v1118_v50 }
 0x539   :  { %v1101_v8 = vmul.f32 %v1451_v31, %v1100_v12 }
 0x53a   :  { %v1083_v54 = vadd.f32 %v1449_v23, %v1082_v57  ;;  %v1120_v29 = vmul.f32 %v1453_v49, %v1119_v62 }
 0x53b   :  { %v1102_v6 = vadd.f32 %v1451_v31, %v1101_v8 }
 0x53c   :  { %v1087_v5 = vsel %vm1086_vm15, %v1449_v23, %v1083_v54  ;;  %v1121_v11 = vadd.f32 %v1453_v49, %v1120_v29 }
 0x53d   :  { %v1092_v25 = vsel %vm1089_vm1, %v1091_v30, %v1087_v5  ;;  %v1106_v7 = vsel %vm1105_vm2, %v1451_v31, %v1102_v6 }
 0x53e   :  { %v1111_v28 = vsel %vm1108_vm3, %v1110_v13, %v1106_v7  ;;  %v1134_v0 = vmul.f32 %v1455_v10, %v1092_v25  ;;  %v1125_v58 = vsel %vm1124_vm6, %v1453_v49, %v1121_v11 }
 0x53f   :  { %v1133_v9 = vmul.f32 %v1111_v28, %v1964_v55  ;;  %v1130_v37 = vsel %vm1127_vm7, %v1129_v18, %v1125_v58 }
 0x541   :  { %v1135_v51 = vadd.f32 %v1134_v0, %v1133_v9 }
 0x543   :  { %1456 = vtanh.f32 %v1135_v51  ;;  %1288 = vst [vmem:[%s2006_s5 + $0x8] sm:$0xff] %v1135_v51 }
 0x549   :  { %v1457_v38 = vpop.eup %1456 }
 0x54a   :  { %v1137_v21 = vmul.f32 %v1457_v38, %v1130_v37 }
 0x54c   :  { %1139 = vst [vmem:[%s2006_s5] sm:$0xff] %v1137_v21  ;;  %1205 = vmatmul.f32.gmra.mxu2 %v1137_v21 }
 0x5cf   :  { %v1206_v55 = vpop.f32.mrf.mxu2 }
 0x5d0   :  { %v1207_v63 = vadd.f32 %v1952_v27, %v1206_v55 }
 0x5d2   :  { %1217 = vst.msk [vmem:[%s2005_s4 + $0x38] sm:$0xff] %vm1209_vm14, %v1207_v63 }

</bundles_post_ra>
